<compile_context>
chip_gen: v7x
topology: tpu7x:2x2x1
jax: 0.10.0
libtpu: 0.0.40
codegen_flags: <defaults>
</compile_context>

<pallas_src>
import functools

import jax
import jax.numpy as jnp
from jax.experimental import pallas as pl
from jax.experimental.pallas import tpu as pltpu


# ------------------------------ helpers ------------------------------------ #

def _round_up(x, m):
    return (x + m - 1) // m * m


def _vmem_limit_bytes():
    """Per-generation scoped-VMEM limit (don't hardcode 32 MiB)."""
    try:
        cap = pltpu.get_tpu_info().vmem_capacity_bytes   # 128 MiB v5e/v6e, 64 MiB v7x
    except Exception:
        cap = 64 * 1024 * 1024
    return int(min(cap * 3 // 4, 96 * 1024 * 1024))


def _pick_tile_m(m, per_lane_bytes, vmem_limit, tm_max=2048):
    """Largest multiple-of-128 lane tile (<= tm_max) whose double-buffered
    footprint stays well inside the scoped VMEM limit."""
    tm = min(_round_up(m, 128), tm_max)
    while tm > 128 and per_lane_bytes * tm > vmem_limit // 2:
        tm = max(128, (tm // 2) // 128 * 128)
    return tm


def _div_mod(x, d):
    """Constant-divisor div/mod; shift/mask for powers of two (guaranteed lowering)."""
    if d & (d - 1) == 0:
        s = d.bit_length() - 1
        return x >> s, x & (d - 1)
    return x // d, x % d


# ----------------------------- Pallas kernels ------------------------------ #

def _down_matmul_kernel(w_ref, p_ref, o_ref):
    # (Co, K+1) bf16 @ (K+1, TM) bf16 -> f32; bias folded as a ones-row of p;
    # the up-path ReLU is fused into this epilogue.
    acc = jnp.dot(w_ref[...], p_ref[...], preferred_element_type=jnp.float32)
    o_ref[...] = jnp.maximum(acc, 0.0).astype(o_ref.dtype)


def _up_matmul_bn_kernel(w_ref, p_ref, gb_ref, y_ref, ss_ref, sum_ref, sq_ref, *,
                         outer_nc, dims, m_total, bn_count, eps):
    # One parity-merged ConvTranspose matmul (Co=8*outer_nc) with BN sum/sumsq
    # accumulation fused into the epilogue (free VPU/XLU filler under DMA).
    t = pl.program_id(0)
    tm = y_ref.shape[1]
    Do, Ho, Wo = dims

    @pl.when(t == 0)
    def _():
        sum_ref[...] = jnp.zeros_like(sum_ref)
        sq_ref[...] = jnp.zeros_like(sq_ref)

    acc = jnp.dot(w_ref[...], p_ref[...], preferred_element_type=jnp.float32)
    y_ref[...] = acc

    # Mask (a) the ragged M tail and (b) odd-parity positions that fall outside
    # the true (2*Do-1, 2*Ho-1, 2*Wo-1) ConvTranspose extent (cropped pre-BN).
    m = t * tm + jax.lax.broadcasted_iota(jnp.int32, (1, tm), 1)
    q, xo = _div_mod(m, Wo)
    q, yo = _div_mod(q, Ho)
    _, zo = _div_mod(q, Do)
    tail_ok = m < m_total
    for e in range(8):                      # static: one row-block per parity
        ez, ey, ex = (e >> 2) & 1, (e >> 1) & 1, e & 1
        ok = tail_ok
        if ez:
            ok = jnp.logical_and(ok, zo < Do - 1)
        if ey:
            ok = jnp.logical_and(ok, yo < Ho - 1)
        if ex:
            ok = jnp.logical_and(ok, xo < Wo - 1)
        blk = jnp.where(ok, acc[e * outer_nc:(e + 1) * outer_nc, :], 0.0)
        sum_ref[...] += jnp.sum(blk, axis=1, keepdims=True)
        sq_ref[...] += jnp.sum(blk * blk, axis=1, keepdims=True)

    @pl.when(t == pl.num_programs(0) - 1)
    def _():
        inv = 1.0 / bn_count
        mean = sum_ref[...] * inv
        # TODO(synk): E[x^2]-E[x]^2 can cancel for large-mean activations;
        # a Welford/shifted accumulation would be numerically safer.
        var = jnp.maximum(sq_ref[...] * inv - mean * mean, 0.0)
        scale = gb_ref[:, 0:1] * jax.lax.rsqrt(var + eps)
        shift = gb_ref[:, 1:2] - mean * scale
        col = jax.lax.broadcasted_iota(jnp.int32, (outer_nc, 2), 1)
        ss_ref[...] = jnp.where(col == 0, scale, shift)     # single store


# ------------------------------ wrappers ------------------------------------ #

def down_conv_matmul(w, p, co, out_dtype=jnp.bfloat16):
    """act(W @ P): tiled/double-buffered over lane-dense M, resident weight."""
    kp1, m = p.shape
    lim = _vmem_limit_bytes()
    tm = _pick_tile_m(m, 2 * (kp1 * 2 + co * 2), lim)
    grid = (pl.cdiv(m, tm),)
    return pl.pallas_call(
        _down_matmul_kernel,
        out_shape=jax.ShapeDtypeStruct((co, m), out_dtype),
        grid=grid,
        in_specs=[pl.BlockSpec((co, kp1), lambda i: (0, 0)),    # resident weight+bias
                  pl.BlockSpec((kp1, tm), lambda i: (0, i))],   # streamed bf16 patches
        out_specs=pl.BlockSpec((co, tm), lambda i: (0, i)),
        compiler_params=pltpu.CompilerParams(
            dimension_semantics=("parallel",), vmem_limit_bytes=lim),
        cost_estimate=pl.CostEstimate(
            flops=2 * co * kp1 * m, transcendentals=0,
            bytes_accessed=kp1 * m * 2 + co * kp1 * 2 + co * m * 2),
    )(w, p)


def up_conv_matmul_bn(wb, p, gb, outer_nc, dims, bn_count, eps=1e-5):
    """Parity-merged ConvTranspose matmul + fused BN-stats epilogue."""
    kp1, m = p.shape
    co_big = wb.shape[0]
    lim = _vmem_limit_bytes()
    tm = _pick_tile_m(m, 2 * (kp1 * 2 + co_big * 4), lim)
    grid = (pl.cdiv(m, tm),)
    kern = functools.partial(_up_matmul_bn_kernel, outer_nc=outer_nc, dims=dims,
                             m_total=m, bn_count=float(bn_count), eps=eps)
    return pl.pallas_call(
        kern,
        out_shape=(jax.ShapeDtypeStruct((co_big, m), jnp.float32),
                   jax.ShapeDtypeStruct((outer_nc, 2), jnp.float32)),
        grid=grid,
        in_specs=[pl.BlockSpec((co_big, kp1), lambda i: (0, 0)),
                  pl.BlockSpec((kp1, tm), lambda i: (0, i)),
                  pl.BlockSpec((outer_nc, 2), lambda i: (0, 0))],
        out_specs=(pl.BlockSpec((co_big, tm), lambda i: (0, i)),
                   # NOTE: (outer_nc, 2) accumulator output relies on residency
                   # across the single "arbitrary" axis; add a combine step if
                   # this axis is ever split (e.g. v7x core-parallel).
                   pl.BlockSpec((outer_nc, 2), lambda i: (0, 0))),
        scratch_shapes=[pltpu.VMEM((outer_nc, 1), jnp.float32),
                        pltpu.VMEM((outer_nc, 1), jnp.float32)],
        compiler_params=pltpu.CompilerParams(
            # M is also the BN reduction axis -> "arbitrary".
            # TODO(synk): on v7x, split the stats reduction across the two
            # TensorCores (core-parallel leading axis + tiny combine).
            dimension_semantics=("arbitrary",), vmem_limit_bytes=lim),
        cost_estimate=pl.CostEstimate(
            flops=2 * co_big * kp1 * m, transcendentals=0,
            bytes_accessed=kp1 * m * 2 + co_big * kp1 * 2 + co_big * m * 4),
    )(wb, p, gb)


# ------------------------------ parameters ---------------------------------- #

def init_params(key, input_nc, inner_nc, outer_nc):
    k1, k2, k3, k4 = jax.random.split(key, 4)
    # PyTorch layouts: Conv3d (out,in,kz,ky,kx); ConvTranspose3d (in,out,kz,ky,kx)
    w_down = jax.random.normal(k1, (inner_nc, input_nc, 3, 3, 3), jnp.float32) * 0.1
    b_down = jax.random.normal(k2, (inner_nc,), jnp.float32) * 0.1
    w_up = jax.random.normal(k3, (inner_nc, outer_nc, 3, 3, 3), jnp.float32) * 0.1
    b_up = jax.random.normal(k4, (outer_nc,), jnp.float32) * 0.1
    return dict(w_down=w_down, b_down=b_down, w_up=w_up, b_up=b_up,
                bn_gamma=jnp.ones((outer_nc,), jnp.float32),
                bn_beta=jnp.zeros((outer_nc,), jnp.float32))


def _build_up_weight(w_up, b_up):
    """(8*outer_nc, 8*inner_nc + 1) block-structured ConvTranspose weight:
    row block = output parity (ez,ey,ex), column block = tap offset (oz,oy,ox);
    last column = bias (ones-row trick)."""
    inner_nc, outer_nc = w_up.shape[0], w_up.shape[1]
    kmap = {(0, 0): 1, (1, 0): 2, (1, 1): 0}      # (out parity, tap offset) -> k index
    rows = []
    for e in range(8):
        ez, ey, ex = (e >> 2) & 1, (e >> 1) & 1, e & 1
        blocks = []
        for o in range(8):
            oz, oy, ox = (o >> 2) & 1, (o >> 1) & 1, o & 1
            if (ez, oz) in kmap and (ey, oy) in kmap and (ex, ox) in kmap:
                kz, ky, kx = kmap[(ez, oz)], kmap[(ey, oy)], kmap[(ex, ox)]
                blocks.append(w_up[:, :, kz, ky, kx].T)          # (outer, inner)
            else:
                blocks.append(jnp.zeros((outer_nc, inner_nc), w_up.dtype))
        rows.append(jnp.concatenate(blocks, axis=1))
    wb = jnp.concatenate(rows, axis=0)                           # (8*outer, 8*inner)
    bias = jnp.tile(b_up[:, None], (8, 1))                       # (8*outer, 1)
    return jnp.concatenate([wb, bias], axis=1).astype(jnp.bfloat16)


# ------------------------------ forward ------------------------------------- #

def unet_innermost_forward(x, params):
    """UNetSkipConnectionBlock3d(innermost=True) forward. Input/output NCDHW."""
    N, cin, D, H, W = x.shape
    inner_nc = params["w_down"].shape[0]
    outer_nc = params["w_up"].shape[1]
    Do, Ho, Wo = [(s + 2 - 3) // 2 + 1 for s in (D, H, W)]
    M = N * Do * Ho * Wo

    # ---- down: LeakyReLU(0.2) -> Conv3d(k3,s2,p1) -> ReLU (fused epilogue) --
    # im2col produced by ONE fused XLA gather pass directly in bf16 (LeakyReLU,
    # transpose, pad folded in); no f32 slab, no wrapper pad/slice passes.
    x_cl = jnp.transpose(x, (1, 0, 2, 3, 4))
    x_act = jnp.where(x_cl >= 0, x_cl, 0.2 * x_cl).astype(jnp.bfloat16)
    xp = jnp.pad(x_act, ((0, 0), (0, 0), (1, 1), (1, 1), (1, 1)))
    taps = []
    for kz in range(3):
        for ky in range(3):
            for kx in range(3):
                taps.append(xp[:, :, kz:kz + 2 * Do - 1:2,
                                     ky:ky + 2 * Ho - 1:2,
                                     kx:kx + 2 * Wo - 1:2])
    p_down = jnp.stack(taps, axis=0).reshape(27 * cin, M)
    p_down = jnp.concatenate([p_down, jnp.ones((1, M), jnp.bfloat16)], axis=0)
    w_down = jnp.transpose(params["w_down"], (0, 2, 3, 4, 1)).reshape(inner_nc, 27 * cin)
    w_down = jnp.concatenate([w_down, params["b_down"][:, None]],
                             axis=1).astype(jnp.bfloat16)
    h2d = down_conv_matmul(w_down, p_down, inner_nc)       # (inner_nc, M) bf16, ReLU'd

    # ---- up: ConvTranspose3d(k3,s2,p1) as ONE parity-merged matmul ----------
    # 8-offset im2col of h (tiny, bf16 at source); zero-stuffed upsample never
    # materialized; BN stats fused into the matmul epilogue.
    h = h2d.reshape(inner_nc, N, Do, Ho, Wo)
    hp = jnp.pad(h, ((0, 0), (0, 0), (0, 1), (0, 1), (0, 1)))
    up_taps = []
    for o in range(8):
        oz, oy, ox = (o >> 2) & 1, (o >> 1) & 1, o & 1
        up_taps.append(hp[:, :, oz:oz + Do, oy:oy + Ho, ox:ox + Wo])
    p_up = jnp.stack(up_taps, axis=0).reshape(8 * inner_nc, M)
    p_up = jnp.concatenate([p_up, jnp.ones((1, M), jnp.bfloat16)], axis=0)
    wb = _build_up_weight(params["w_up"], params["b_up"])
    gb = jnp.stack([params["bn_gamma"], params["bn_beta"]], axis=1)   # (outer_nc, 2)
    bn_count = N * (2 * Do - 1) * (2 * Ho - 1) * (2 * Wo - 1)
    y_big, ss = up_conv_matmul_bn(wb, p_up, gb, outer_nc, (Do, Ho, Wo), bn_count)

    # ---- epilogue: BN apply + parity de-interleave + F.pad + skip concat ----
    # Single fused XLA pass over y (lane-dim parity interleave is a pure
    # relayout; left to XLA rather than Mosaic lane-strided stores).
    scale = jnp.tile(ss[:, 0], 8)[:, None]                  # (8*outer_nc, 1)
    shift = jnp.tile(ss[:, 1], 8)[:, None]
    ybn = y_big * scale + shift
    y8 = ybn.reshape(2, 2, 2, outer_nc, N, Do, Ho, Wo)      # (ez,ey,ex,c,n,zo,yo,xo)
    yi = jnp.transpose(y8, (4, 3, 5, 0, 6, 1, 7, 2)).reshape(
        N, outer_nc, 2 * Do, 2 * Ho, 2 * Wo)
    y = yi[:, :, :2 * Do - 1, :2 * Ho - 1, :2 * Wo - 1]     # true ConvTranspose extent
    # F.pad with the PyTorch module's *crossed* axis order (D pad from x[-1],
    # W pad from x[-3]); identical for cubic inputs, reproduced faithfully.
    pad_d = x.shape[-1] - y.shape[-1]
    pad_h = x.shape[-2] - y.shape[-2]
    pad_w = x.shape[-3] - y.shape[-3]
    y = jnp.pad(y, ((0, 0), (0, 0), (0, pad_d), (0, pad_h), (0, pad_w)))
    return jnp.concatenate([x, y.astype(x.dtype)], axis=1)


# --------------------------------- main ------------------------------------- #

if __name__ == "__main__":
    key = jax.random.PRNGKey(0)
    kx, kp = jax.random.split(key)

    # innermost block: input_nc = outer_nc = 4, inner_nc = 8, spatial 16^3, batch 2
    N, input_nc, inner_nc, outer_nc, S = 2, 4, 8, 4, 16
    x = jax.random.normal(kx, (N, input_nc, S, S, S), jnp.float32)
    params = init_params(kp, input_nc, inner_nc, outer_nc)

    fwd = jax.jit(unet_innermost_forward)
    out = jax.block_until_ready(fwd(x, params))

    assert out.shape == (N, input_nc + outer_nc, S, S, S), out.shape
    assert out.dtype == jnp.float32
    assert bool(jnp.all(jnp.isfinite(out)))
    print("KERNEL_OK")
</pallas_src>

<mosaic_0001>
module attributes {stable_mosaic.version = 11 : i64} {
  func.func @_down_matmul_kernel(%arg0: i32, %arg1: memref<8x109xbf16, #tpu.memory_space<vmem>>, %arg2: memref<109x1024xbf16, #tpu.memory_space<vmem>>, %arg3: memref<8x1024xbf16, #tpu.memory_space<vmem>>) attributes {dimension_semantics = [#tpu.dimension_semantics<parallel>], iteration_bounds = array<i64: 1>, scalar_prefetch = 0 : i64, scratch_operands = 0 : i64, tpu.core_type = #tpu.core_type<tc>, window_params = [{pipeline_mode = #tpu.pipeline_mode<synchronous>, transform_indices = @transform_0, window_bounds = array<i64: 8, 109>}, {transform_indices = @transform_1, window_bounds = array<i64: 109, 1024>}, {transform_indices = @transform_2, window_bounds = array<i64: 8, 1024>}]} {
    %c0 = arith.constant 0 : index
    %c0_0 = arith.constant 0 : index
    %0 = vector.load %arg1[%c0, %c0_0] : memref<8x109xbf16, #tpu.memory_space<vmem>>, vector<8x109xbf16>
    %c0_1 = arith.constant 0 : index
    %c0_2 = arith.constant 0 : index
    %1 = vector.load %arg2[%c0_1, %c0_2] : memref<109x1024xbf16, #tpu.memory_space<vmem>>, vector<109x1024xbf16>
    %cst = arith.constant dense<0.000000e+00> : vector<8x1024xf32>
    %2 = tpu.matmul %0, %1, %cst {dimension_numbers = #tpu.dot_dimension_numbers<[1], [0], [0], [1], [0, 0, 1, 1], [], []>} : vector<8x109xbf16>, vector<109x1024xbf16>, vector<8x1024xf32> -> vector<8x1024xf32>
    %cst_3 = arith.constant 0.000000e+00 : f32
    %3 = vector.broadcast %cst_3 : f32 to vector<8x1024xf32>
    %4 = arith.maximumf %2, %3 : vector<8x1024xf32>
    %5 = arith.truncf %4 : vector<8x1024xf32> to vector<8x1024xbf16>
    %c0_4 = arith.constant 0 : index
    %c0_5 = arith.constant 0 : index
    %6 = vector.load %arg3[%c0_4, %c0_5] : memref<8x1024xbf16, #tpu.memory_space<vmem>>, vector<8x1024xbf16>
    tpu.vector_store %arg3[%c0_4, %c0_5], %5 {strides = array<i32>} : memref<8x1024xbf16, #tpu.memory_space<vmem>>, vector<8x1024xbf16>,
    return
  }
  func.func @transform_0(%arg0: i32) -> (i32, i32) {
    %c0_i32 = arith.constant 0 : i32
    %c0_i32_0 = arith.constant 0 : i32
    %c0_i32_1 = arith.constant 0 : i32
    return %c0_i32, %c0_i32_0 : i32, i32
  }
  func.func @transform_1(%arg0: i32) -> (i32, i32) {
    %c0_i32 = arith.constant 0 : i32
    %c0_i32_0 = arith.constant 0 : i32
    return %c0_i32, %arg0 : i32, i32
  }
  func.func @transform_2(%arg0: i32) -> (i32, i32) {
    %c0_i32 = arith.constant 0 : i32
    %c0_i32_0 = arith.constant 0 : i32
    return %c0_i32, %arg0 : i32, i32
  }
}

module attributes {stable_mosaic.version = 11 : i64} {
  func.func @_up_matmul_bn_kernel(%arg0: i32, %arg1: memref<32x65xbf16, #tpu.memory_space<vmem>>, %arg2: memref<65x1024xbf16, #tpu.memory_space<vmem>>, %arg3: memref<4x2xf32, #tpu.memory_space<vmem>>, %arg4: memref<32x1024xf32, #tpu.memory_space<vmem>>, %arg5: memref<4x2xf32, #tpu.memory_space<vmem>>, %arg6: memref<4x1xf32, #tpu.memory_space<vmem>>, %arg7: memref<4x1xf32, #tpu.memory_space<vmem>>) attributes {dimension_semantics = [#tpu.dimension_semantics<arbitrary>], iteration_bounds = array<i64: 1>, scalar_prefetch = 0 : i64, scratch_operands = 2 : i64, tpu.core_type = #tpu.core_type<tc>, window_params = [{pipeline_mode = #tpu.pipeline_mode<synchronous>, transform_indices = @transform_0, window_bounds = array<i64: 32, 65>}, {transform_indices = @transform_1, window_bounds = array<i64: 65, 1024>}, {pipeline_mode = #tpu.pipeline_mode<synchronous>, transform_indices = @transform_2, window_bounds = array<i64: 4, 2>}, {transform_indices = @transform_3, window_bounds = array<i64: 32, 1024>}, {pipeline_mode = #tpu.pipeline_mode<synchronous>, transform_indices = @transform_4, window_bounds = array<i64: 4, 2>}]} {
    %c0_i32 = arith.constant 0 : i32
    %0 = arith.cmpi eq, %arg0, %c0_i32 : i32
    %1 = arith.extui %0 : i1 to i32
    %c0_i32_0 = arith.constant 0 : i32
    %2 = arith.cmpi ne, %1, %c0_i32_0 : i32
    scf.if %2 {
      %cst_112 = arith.constant 0.000000e+00 : f32
      %190 = vector.broadcast %cst_112 : f32 to vector<4x1xf32>
      %c0_113 = arith.constant 0 : index
      %c0_114 = arith.constant 0 : index
      %191 = vector.load %arg6[%c0_113, %c0_114] : memref<4x1xf32, #tpu.memory_space<vmem>>, vector<4x1xf32>
      tpu.vector_store %arg6[%c0_113, %c0_114], %190 {strides = array<i32>} : memref<4x1xf32, #tpu.memory_space<vmem>>, vector<4x1xf32>,
      %cst_115 = arith.constant 0.000000e+00 : f32
      %192 = vector.broadcast %cst_115 : f32 to vector<4x1xf32>
      %c0_116 = arith.constant 0 : index
      %c0_117 = arith.constant 0 : index
      %193 = vector.load %arg7[%c0_116, %c0_117] : memref<4x1xf32, #tpu.memory_space<vmem>>, vector<4x1xf32>
      tpu.vector_store %arg7[%c0_116, %c0_117], %192 {strides = array<i32>} : memref<4x1xf32, #tpu.memory_space<vmem>>, vector<4x1xf32>,
    } else {
    }
    %c0 = arith.constant 0 : index
    %c0_1 = arith.constant 0 : index
    %3 = vector.load %arg1[%c0, %c0_1] : memref<32x65xbf16, #tpu.memory_space<vmem>>, vector<32x65xbf16>
    %c0_2 = arith.constant 0 : index
    %c0_3 = arith.constant 0 : index
    %4 = vector.load %arg2[%c0_2, %c0_3] : memref<65x1024xbf16, #tpu.memory_space<vmem>>, vector<65x1024xbf16>
    %cst = arith.constant dense<0.000000e+00> : vector<32x1024xf32>
    %5 = tpu.matmul %3, %4, %cst {dimension_numbers = #tpu.dot_dimension_numbers<[1], [0], [0], [1], [0, 0, 1, 1], [], []>} : vector<32x65xbf16>, vector<65x1024xbf16>, vector<32x1024xf32> -> vector<32x1024xf32>
    %c0_4 = arith.constant 0 : index
    %c0_5 = arith.constant 0 : index
    %6 = vector.load %arg4[%c0_4, %c0_5] : memref<32x1024xf32, #tpu.memory_space<vmem>>, vector<32x1024xf32>
    tpu.vector_store %arg4[%c0_4, %c0_5], %5 {strides = array<i32>} : memref<32x1024xf32, #tpu.memory_space<vmem>>, vector<32x1024xf32>,
    %c1024_i32 = arith.constant 1024 : i32
    %7 = arith.muli %arg0, %c1024_i32 : i32
    %8 = tpu.iota {dimensions = array<i32: 1>} : vector<1x1024xi32>
    %9 = vector.broadcast %7 : i32 to vector<1x1024xi32>
    %10 = arith.addi %9, %8 : vector<1x1024xi32>
    %c3_i32 = arith.constant 3 : i32
    %11 = vector.broadcast %c3_i32 : i32 to vector<1x1024xi32>
    %12 = arith.shrsi %10, %11 : vector<1x1024xi32>
    %c7_i32 = arith.constant 7 : i32
    %13 = vector.broadcast %c7_i32 : i32 to vector<1x1024xi32>
    %14 = arith.andi %10, %13 : vector<1x1024xi32>
    %c3_i32_6 = arith.constant 3 : i32
    %15 = vector.broadcast %c3_i32_6 : i32 to vector<1x1024xi32>
    %16 = arith.shrsi %12, %15 : vector<1x1024xi32>
    %c7_i32_7 = arith.constant 7 : i32
    %17 = vector.broadcast %c7_i32_7 : i32 to vector<1x1024xi32>
    %18 = arith.andi %12, %17 : vector<1x1024xi32>
    %c7_i32_8 = arith.constant 7 : i32
    %19 = vector.broadcast %c7_i32_8 : i32 to vector<1x1024xi32>
    %20 = arith.andi %16, %19 : vector<1x1024xi32>
    %c1024_i32_9 = arith.constant 1024 : i32
    %21 = vector.broadcast %c1024_i32_9 : i32 to vector<1x1024xi32>
    %22 = arith.cmpi slt, %10, %21 : vector<1x1024xi32>
    %23 = vector.extract_strided_slice %5 {offsets = [0, 0], sizes = [4, 1024], strides = [1, 1]} : vector<32x1024xf32> to vector<4x1024xf32>
    %cst_10 = arith.constant 0.000000e+00 : f32
    %24 = vector.shape_cast %22 : vector<1x1024xi1> to vector<1x1024xi1>
    %25 = vector.broadcast %24 : vector<1x1024xi1> to vector<4x1024xi1>
    %26 = vector.broadcast %cst_10 : f32 to vector<4x1024xf32>
    %27 = arith.select %25, %23, %26 : vector<4x1024xi1>, vector<4x1024xf32>
    %c0_11 = arith.constant 0 : index
    %c0_12 = arith.constant 0 : index
    %28 = vector.load %arg6[%c0_11, %c0_12] : memref<4x1xf32, #tpu.memory_space<vmem>>, vector<4x1xf32>
    %cst_13 = arith.constant dense<0.000000e+00> : vector<4xf32>
    %29 = vector.multi_reduction <add>, %27, %cst_13 [1] : vector<4x1024xf32> to vector<4xf32>
    %30 = vector.shape_cast %29 : vector<4xf32> to vector<4x1xf32>
    %31 = arith.addf %28, %30 : vector<4x1xf32>
    %c0_14 = arith.constant 0 : index
    %c0_15 = arith.constant 0 : index
    %32 = vector.load %arg6[%c0_14, %c0_15] : memref<4x1xf32, #tpu.memory_space<vmem>>, vector<4x1xf32>
    tpu.vector_store %arg6[%c0_14, %c0_15], %31 {strides = array<i32>} : memref<4x1xf32, #tpu.memory_space<vmem>>, vector<4x1xf32>,
    %c0_16 = arith.constant 0 : index
    %c0_17 = arith.constant 0 : index
    %33 = vector.load %arg7[%c0_16, %c0_17] : memref<4x1xf32, #tpu.memory_space<vmem>>, vector<4x1xf32>
    %34 = arith.mulf %27, %27 : vector<4x1024xf32>
    %cst_18 = arith.constant dense<0.000000e+00> : vector<4xf32>
    %35 = vector.multi_reduction <add>, %34, %cst_18 [1] : vector<4x1024xf32> to vector<4xf32>
    %36 = vector.shape_cast %35 : vector<4xf32> to vector<4x1xf32>
    %37 = arith.addf %33, %36 : vector<4x1xf32>
    %c0_19 = arith.constant 0 : index
    %c0_20 = arith.constant 0 : index
    %38 = vector.load %arg7[%c0_19, %c0_20] : memref<4x1xf32, #tpu.memory_space<vmem>>, vector<4x1xf32>
    tpu.vector_store %arg7[%c0_19, %c0_20], %37 {strides = array<i32>} : memref<4x1xf32, #tpu.memory_space<vmem>>, vector<4x1xf32>,
    %c7_i32_21 = arith.constant 7 : i32
    %39 = vector.broadcast %c7_i32_21 : i32 to vector<1x1024xi32>
    %40 = arith.cmpi slt, %14, %39 : vector<1x1024xi32>
    %41 = arith.andi %22, %40 : vector<1x1024xi1>
    %42 = vector.extract_strided_slice %5 {offsets = [4, 0], sizes = [4, 1024], strides = [1, 1]} : vector<32x1024xf32> to vector<4x1024xf32>
    %cst_22 = arith.constant 0.000000e+00 : f32
    %43 = vector.shape_cast %41 : vector<1x1024xi1> to vector<1x1024xi1>
    %44 = vector.broadcast %43 : vector<1x1024xi1> to vector<4x1024xi1>
    %45 = vector.broadcast %cst_22 : f32 to vector<4x1024xf32>
    %46 = arith.select %44, %42, %45 : vector<4x1024xi1>, vector<4x1024xf32>
    %c0_23 = arith.constant 0 : index
    %c0_24 = arith.constant 0 : index
    %47 = vector.load %arg6[%c0_23, %c0_24] : memref<4x1xf32, #tpu.memory_space<vmem>>, vector<4x1xf32>
    %cst_25 = arith.constant dense<0.000000e+00> : vector<4xf32>
    %48 = vector.multi_reduction <add>, %46, %cst_25 [1] : vector<4x1024xf32> to vector<4xf32>
    %49 = vector.shape_cast %48 : vector<4xf32> to vector<4x1xf32>
    %50 = arith.addf %47, %49 : vector<4x1xf32>
    %c0_26 = arith.constant 0 : index
    %c0_27 = arith.constant 0 : index
    %51 = vector.load %arg6[%c0_26, %c0_27] : memref<4x1xf32, #tpu.memory_space<vmem>>, vector<4x1xf32>
    tpu.vector_store %arg6[%c0_26, %c0_27], %50 {strides = array<i32>} : memref<4x1xf32, #tpu.memory_space<vmem>>, vector<4x1xf32>,
    %c0_28 = arith.constant 0 : index
    %c0_29 = arith.constant 0 : index
    %52 = vector.load %arg7[%c0_28, %c0_29] : memref<4x1xf32, #tpu.memory_space<vmem>>, vector<4x1xf32>
    %53 = arith.mulf %46, %46 : vector<4x1024xf32>
    %cst_30 = arith.constant dense<0.000000e+00> : vector<4xf32>
    %54 = vector.multi_reduction <add>, %53, %cst_30 [1] : vector<4x1024xf32> to vector<4xf32>
    %55 = vector.shape_cast %54 : vector<4xf32> to vector<4x1xf32>
    %56 = arith.addf %52, %55 : vector<4x1xf32>
    %c0_31 = arith.constant 0 : index
    %c0_32 = arith.constant 0 : index
    %57 = vector.load %arg7[%c0_31, %c0_32] : memref<4x1xf32, #tpu.memory_space<vmem>>, vector<4x1xf32>
    tpu.vector_store %arg7[%c0_31, %c0_32], %56 {strides = array<i32>} : memref<4x1xf32, #tpu.memory_space<vmem>>, vector<4x1xf32>,
    %c7_i32_33 = arith.constant 7 : i32
    %58 = vector.broadcast %c7_i32_33 : i32 to vector<1x1024xi32>
    %59 = arith.cmpi slt, %18, %58 : vector<1x1024xi32>
    %60 = arith.andi %22, %59 : vector<1x1024xi1>
    %61 = vector.extract_strided_slice %5 {offsets = [8, 0], sizes = [4, 1024], strides = [1, 1]} : vector<32x1024xf32> to vector<4x1024xf32>
    %cst_34 = arith.constant 0.000000e+00 : f32
    %62 = vector.shape_cast %60 : vector<1x1024xi1> to vector<1x1024xi1>
    %63 = vector.broadcast %62 : vector<1x1024xi1> to vector<4x1024xi1>
    %64 = vector.broadcast %cst_34 : f32 to vector<4x1024xf32>
    %65 = arith.select %63, %61, %64 : vector<4x1024xi1>, vector<4x1024xf32>
    %c0_35 = arith.constant 0 : index
    %c0_36 = arith.constant 0 : index
    %66 = vector.load %arg6[%c0_35, %c0_36] : memref<4x1xf32, #tpu.memory_space<vmem>>, vector<4x1xf32>
    %cst_37 = arith.constant dense<0.000000e+00> : vector<4xf32>
    %67 = vector.multi_reduction <add>, %65, %cst_37 [1] : vector<4x1024xf32> to vector<4xf32>
    %68 = vector.shape_cast %67 : vector<4xf32> to vector<4x1xf32>
    %69 = arith.addf %66, %68 : vector<4x1xf32>
    %c0_38 = arith.constant 0 : index
    %c0_39 = arith.constant 0 : index
    %70 = vector.load %arg6[%c0_38, %c0_39] : memref<4x1xf32, #tpu.memory_space<vmem>>, vector<4x1xf32>
    tpu.vector_store %arg6[%c0_38, %c0_39], %69 {strides = array<i32>} : memref<4x1xf32, #tpu.memory_space<vmem>>, vector<4x1xf32>,
    %c0_40 = arith.constant 0 : index
    %c0_41 = arith.constant 0 : index
    %71 = vector.load %arg7[%c0_40, %c0_41] : memref<4x1xf32, #tpu.memory_space<vmem>>, vector<4x1xf32>
    %72 = arith.mulf %65, %65 : vector<4x1024xf32>
    %cst_42 = arith.constant dense<0.000000e+00> : vector<4xf32>
    %73 = vector.multi_reduction <add>, %72, %cst_42 [1] : vector<4x1024xf32> to vector<4xf32>
    %74 = vector.shape_cast %73 : vector<4xf32> to vector<4x1xf32>
    %75 = arith.addf %71, %74 : vector<4x1xf32>
    %c0_43 = arith.constant 0 : index
    %c0_44 = arith.constant 0 : index
    %76 = vector.load %arg7[%c0_43, %c0_44] : memref<4x1xf32, #tpu.memory_space<vmem>>, vector<4x1xf32>
    tpu.vector_store %arg7[%c0_43, %c0_44], %75 {strides = array<i32>} : memref<4x1xf32, #tpu.memory_space<vmem>>, vector<4x1xf32>,
    %c7_i32_45 = arith.constant 7 : i32
    %77 = vector.broadcast %c7_i32_45 : i32 to vector<1x1024xi32>
    %78 = arith.cmpi slt, %18, %77 : vector<1x1024xi32>
    %79 = arith.andi %22, %78 : vector<1x1024xi1>
    %c7_i32_46 = arith.constant 7 : i32
    %80 = vector.broadcast %c7_i32_46 : i32 to vector<1x1024xi32>
    %81 = arith.cmpi slt, %14, %80 : vector<1x1024xi32>
    %82 = arith.andi %79, %81 : vector<1x1024xi1>
    %83 = vector.extract_strided_slice %5 {offsets = [12, 0], sizes = [4, 1024], strides = [1, 1]} : vector<32x1024xf32> to vector<4x1024xf32>
    %cst_47 = arith.constant 0.000000e+00 : f32
    %84 = vector.shape_cast %82 : vector<1x1024xi1> to vector<1x1024xi1>
    %85 = vector.broadcast %84 : vector<1x1024xi1> to vector<4x1024xi1>
    %86 = vector.broadcast %cst_47 : f32 to vector<4x1024xf32>
    %87 = arith.select %85, %83, %86 : vector<4x1024xi1>, vector<4x1024xf32>
    %c0_48 = arith.constant 0 : index
    %c0_49 = arith.constant 0 : index
    %88 = vector.load %arg6[%c0_48, %c0_49] : memref<4x1xf32, #tpu.memory_space<vmem>>, vector<4x1xf32>
    %cst_50 = arith.constant dense<0.000000e+00> : vector<4xf32>
    %89 = vector.multi_reduction <add>, %87, %cst_50 [1] : vector<4x1024xf32> to vector<4xf32>
    %90 = vector.shape_cast %89 : vector<4xf32> to vector<4x1xf32>
    %91 = arith.addf %88, %90 : vector<4x1xf32>
    %c0_51 = arith.constant 0 : index
    %c0_52 = arith.constant 0 : index
    %92 = vector.load %arg6[%c0_51, %c0_52] : memref<4x1xf32, #tpu.memory_space<vmem>>, vector<4x1xf32>
    tpu.vector_store %arg6[%c0_51, %c0_52], %91 {strides = array<i32>} : memref<4x1xf32, #tpu.memory_space<vmem>>, vector<4x1xf32>,
    %c0_53 = arith.constant 0 : index
    %c0_54 = arith.constant 0 : index
    %93 = vector.load %arg7[%c0_53, %c0_54] : memref<4x1xf32, #tpu.memory_space<vmem>>, vector<4x1xf32>
    %94 = arith.mulf %87, %87 : vector<4x1024xf32>
    %cst_55 = arith.constant dense<0.000000e+00> : vector<4xf32>
    %95 = vector.multi_reduction <add>, %94, %cst_55 [1] : vector<4x1024xf32> to vector<4xf32>
    %96 = vector.shape_cast %95 : vector<4xf32> to vector<4x1xf32>
    %97 = arith.addf %93, %96 : vector<4x1xf32>
    %c0_56 = arith.constant 0 : index
    %c0_57 = arith.constant 0 : index
    %98 = vector.load %arg7[%c0_56, %c0_57] : memref<4x1xf32, #tpu.memory_space<vmem>>, vector<4x1xf32>
    tpu.vector_store %arg7[%c0_56, %c0_57], %97 {strides = array<i32>} : memref<4x1xf32, #tpu.memory_space<vmem>>, vector<4x1xf32>,
    %c7_i32_58 = arith.constant 7 : i32
    %99 = vector.broadcast %c7_i32_58 : i32 to vector<1x1024xi32>
    %100 = arith.cmpi slt, %20, %99 : vector<1x1024xi32>
    %101 = arith.andi %22, %100 : vector<1x1024xi1>
    %102 = vector.extract_strided_slice %5 {offsets = [16, 0], sizes = [4, 1024], strides = [1, 1]} : vector<32x1024xf32> to vector<4x1024xf32>
    %cst_59 = arith.constant 0.000000e+00 : f32
    %103 = vector.shape_cast %101 : vector<1x1024xi1> to vector<1x1024xi1>
    %104 = vector.broadcast %103 : vector<1x1024xi1> to vector<4x1024xi1>
    %105 = vector.broadcast %cst_59 : f32 to vector<4x1024xf32>
    %106 = arith.select %104, %102, %105 : vector<4x1024xi1>, vector<4x1024xf32>
    %c0_60 = arith.constant 0 : index
    %c0_61 = arith.constant 0 : index
    %107 = vector.load %arg6[%c0_60, %c0_61] : memref<4x1xf32, #tpu.memory_space<vmem>>, vector<4x1xf32>
    %cst_62 = arith.constant dense<0.000000e+00> : vector<4xf32>
    %108 = vector.multi_reduction <add>, %106, %cst_62 [1] : vector<4x1024xf32> to vector<4xf32>
    %109 = vector.shape_cast %108 : vector<4xf32> to vector<4x1xf32>
    %110 = arith.addf %107, %109 : vector<4x1xf32>
    %c0_63 = arith.constant 0 : index
    %c0_64 = arith.constant 0 : index
    %111 = vector.load %arg6[%c0_63, %c0_64] : memref<4x1xf32, #tpu.memory_space<vmem>>, vector<4x1xf32>
    tpu.vector_store %arg6[%c0_63, %c0_64], %110 {strides = array<i32>} : memref<4x1xf32, #tpu.memory_space<vmem>>, vector<4x1xf32>,
    %c0_65 = arith.constant 0 : index
    %c0_66 = arith.constant 0 : index
    %112 = vector.load %arg7[%c0_65, %c0_66] : memref<4x1xf32, #tpu.memory_space<vmem>>, vector<4x1xf32>
    %113 = arith.mulf %106, %106 : vector<4x1024xf32>
    %cst_67 = arith.constant dense<0.000000e+00> : vector<4xf32>
    %114 = vector.multi_reduction <add>, %113, %cst_67 [1] : vector<4x1024xf32> to vector<4xf32>
    %115 = vector.shape_cast %114 : vector<4xf32> to vector<4x1xf32>
    %116 = arith.addf %112, %115 : vector<4x1xf32>
    %c0_68 = arith.constant 0 : index
    %c0_69 = arith.constant 0 : index
    %117 = vector.load %arg7[%c0_68, %c0_69] : memref<4x1xf32, #tpu.memory_space<vmem>>, vector<4x1xf32>
    tpu.vector_store %arg7[%c0_68, %c0_69], %116 {strides = array<i32>} : memref<4x1xf32, #tpu.memory_space<vmem>>, vector<4x1xf32>,
    %c7_i32_70 = arith.constant 7 : i32
    %118 = vector.broadcast %c7_i32_70 : i32 to vector<1x1024xi32>
    %119 = arith.cmpi slt, %20, %118 : vector<1x1024xi32>
    %120 = arith.andi %22, %119 : vector<1x1024xi1>
    %c7_i32_71 = arith.constant 7 : i32
    %121 = vector.broadcast %c7_i32_71 : i32 to vector<1x1024xi32>
    %122 = arith.cmpi slt, %14, %121 : vector<1x1024xi32>
    %123 = arith.andi %120, %122 : vector<1x1024xi1>
    %124 = vector.extract_strided_slice %5 {offsets = [20, 0], sizes = [4, 1024], strides = [1, 1]} : vector<32x1024xf32> to vector<4x1024xf32>
    %cst_72 = arith.constant 0.000000e+00 : f32
    %125 = vector.shape_cast %123 : vector<1x1024xi1> to vector<1x1024xi1>
    %126 = vector.broadcast %125 : vector<1x1024xi1> to vector<4x1024xi1>
    %127 = vector.broadcast %cst_72 : f32 to vector<4x1024xf32>
    %128 = arith.select %126, %124, %127 : vector<4x1024xi1>, vector<4x1024xf32>
    %c0_73 = arith.constant 0 : index
    %c0_74 = arith.constant 0 : index
    %129 = vector.load %arg6[%c0_73, %c0_74] : memref<4x1xf32, #tpu.memory_space<vmem>>, vector<4x1xf32>
    %cst_75 = arith.constant dense<0.000000e+00> : vector<4xf32>
    %130 = vector.multi_reduction <add>, %128, %cst_75 [1] : vector<4x1024xf32> to vector<4xf32>
    %131 = vector.shape_cast %130 : vector<4xf32> to vector<4x1xf32>
    %132 = arith.addf %129, %131 : vector<4x1xf32>
    %c0_76 = arith.constant 0 : index
    %c0_77 = arith.constant 0 : index
    %133 = vector.load %arg6[%c0_76, %c0_77] : memref<4x1xf32, #tpu.memory_space<vmem>>, vector<4x1xf32>
    tpu.vector_store %arg6[%c0_76, %c0_77], %132 {strides = array<i32>} : memref<4x1xf32, #tpu.memory_space<vmem>>, vector<4x1xf32>,
    %c0_78 = arith.constant 0 : index
    %c0_79 = arith.constant 0 : index
    %134 = vector.load %arg7[%c0_78, %c0_79] : memref<4x1xf32, #tpu.memory_space<vmem>>, vector<4x1xf32>
    %135 = arith.mulf %128, %128 : vector<4x1024xf32>
    %cst_80 = arith.constant dense<0.000000e+00> : vector<4xf32>
    %136 = vector.multi_reduction <add>, %135, %cst_80 [1] : vector<4x1024xf32> to vector<4xf32>
    %137 = vector.shape_cast %136 : vector<4xf32> to vector<4x1xf32>
    %138 = arith.addf %134, %137 : vector<4x1xf32>
    %c0_81 = arith.constant 0 : index
    %c0_82 = arith.constant 0 : index
    %139 = vector.load %arg7[%c0_81, %c0_82] : memref<4x1xf32, #tpu.memory_space<vmem>>, vector<4x1xf32>
    tpu.vector_store %arg7[%c0_81, %c0_82], %138 {strides = array<i32>} : memref<4x1xf32, #tpu.memory_space<vmem>>, vector<4x1xf32>,
    %c7_i32_83 = arith.constant 7 : i32
    %140 = vector.broadcast %c7_i32_83 : i32 to vector<1x1024xi32>
    %141 = arith.cmpi slt, %20, %140 : vector<1x1024xi32>
    %142 = arith.andi %22, %141 : vector<1x1024xi1>
    %c7_i32_84 = arith.constant 7 : i32
    %143 = vector.broadcast %c7_i32_84 : i32 to vector<1x1024xi32>
    %144 = arith.cmpi slt, %18, %143 : vector<1x1024xi32>
    %145 = arith.andi %142, %144 : vector<1x1024xi1>
    %146 = vector.extract_strided_slice %5 {offsets = [24, 0], sizes = [4, 1024], strides = [1, 1]} : vector<32x1024xf32> to vector<4x1024xf32>
    %cst_85 = arith.constant 0.000000e+00 : f32
    %147 = vector.shape_cast %145 : vector<1x1024xi1> to vector<1x1024xi1>
    %148 = vector.broadcast %147 : vector<1x1024xi1> to vector<4x1024xi1>
    %149 = vector.broadcast %cst_85 : f32 to vector<4x1024xf32>
    %150 = arith.select %148, %146, %149 : vector<4x1024xi1>, vector<4x1024xf32>
    %c0_86 = arith.constant 0 : index
    %c0_87 = arith.constant 0 : index
    %151 = vector.load %arg6[%c0_86, %c0_87] : memref<4x1xf32, #tpu.memory_space<vmem>>, vector<4x1xf32>
    %cst_88 = arith.constant dense<0.000000e+00> : vector<4xf32>
    %152 = vector.multi_reduction <add>, %150, %cst_88 [1] : vector<4x1024xf32> to vector<4xf32>
    %153 = vector.shape_cast %152 : vector<4xf32> to vector<4x1xf32>
    %154 = arith.addf %151, %153 : vector<4x1xf32>
    %c0_89 = arith.constant 0 : index
    %c0_90 = arith.constant 0 : index
    %155 = vector.load %arg6[%c0_89, %c0_90] : memref<4x1xf32, #tpu.memory_space<vmem>>, vector<4x1xf32>
    tpu.vector_store %arg6[%c0_89, %c0_90], %154 {strides = array<i32>} : memref<4x1xf32, #tpu.memory_space<vmem>>, vector<4x1xf32>,
    %c0_91 = arith.constant 0 : index
    %c0_92 = arith.constant 0 : index
    %156 = vector.load %arg7[%c0_91, %c0_92] : memref<4x1xf32, #tpu.memory_space<vmem>>, vector<4x1xf32>
    %157 = arith.mulf %150, %150 : vector<4x1024xf32>
    %cst_93 = arith.constant dense<0.000000e+00> : vector<4xf32>
    %158 = vector.multi_reduction <add>, %157, %cst_93 [1] : vector<4x1024xf32> to vector<4xf32>
    %159 = vector.shape_cast %158 : vector<4xf32> to vector<4x1xf32>
    %160 = arith.addf %156, %159 : vector<4x1xf32>
    %c0_94 = arith.constant 0 : index
    %c0_95 = arith.constant 0 : index
    %161 = vector.load %arg7[%c0_94, %c0_95] : memref<4x1xf32, #tpu.memory_space<vmem>>, vector<4x1xf32>
    tpu.vector_store %arg7[%c0_94, %c0_95], %160 {strides = array<i32>} : memref<4x1xf32, #tpu.memory_space<vmem>>, vector<4x1xf32>,
    %c7_i32_96 = arith.constant 7 : i32
    %162 = vector.broadcast %c7_i32_96 : i32 to vector<1x1024xi32>
    %163 = arith.cmpi slt, %20, %162 : vector<1x1024xi32>
    %164 = arith.andi %22, %163 : vector<1x1024xi1>
    %c7_i32_97 = arith.constant 7 : i32
    %165 = vector.broadcast %c7_i32_97 : i32 to vector<1x1024xi32>
    %166 = arith.cmpi slt, %18, %165 : vector<1x1024xi32>
    %167 = arith.andi %164, %166 : vector<1x1024xi1>
    %c7_i32_98 = arith.constant 7 : i32
    %168 = vector.broadcast %c7_i32_98 : i32 to vector<1x1024xi32>
    %169 = arith.cmpi slt, %14, %168 : vector<1x1024xi32>
    %170 = arith.andi %167, %169 : vector<1x1024xi1>
    %171 = vector.extract_strided_slice %5 {offsets = [28, 0], sizes = [4, 1024], strides = [1, 1]} : vector<32x1024xf32> to vector<4x1024xf32>
    %cst_99 = arith.constant 0.000000e+00 : f32
    %172 = vector.shape_cast %170 : vector<1x1024xi1> to vector<1x1024xi1>
    %173 = vector.broadcast %172 : vector<1x1024xi1> to vector<4x1024xi1>
    %174 = vector.broadcast %cst_99 : f32 to vector<4x1024xf32>
    %175 = arith.select %173, %171, %174 : vector<4x1024xi1>, vector<4x1024xf32>
    %c0_100 = arith.constant 0 : index
    %c0_101 = arith.constant 0 : index
    %176 = vector.load %arg6[%c0_100, %c0_101] : memref<4x1xf32, #tpu.memory_space<vmem>>, vector<4x1xf32>
    %cst_102 = arith.constant dense<0.000000e+00> : vector<4xf32>
    %177 = vector.multi_reduction <add>, %175, %cst_102 [1] : vector<4x1024xf32> to vector<4xf32>
    %178 = vector.shape_cast %177 : vector<4xf32> to vector<4x1xf32>
    %179 = arith.addf %176, %178 : vector<4x1xf32>
    %c0_103 = arith.constant 0 : index
    %c0_104 = arith.constant 0 : index
    %180 = vector.load %arg6[%c0_103, %c0_104] : memref<4x1xf32, #tpu.memory_space<vmem>>, vector<4x1xf32>
    tpu.vector_store %arg6[%c0_103, %c0_104], %179 {strides = array<i32>} : memref<4x1xf32, #tpu.memory_space<vmem>>, vector<4x1xf32>,
    %c0_105 = arith.constant 0 : index
    %c0_106 = arith.constant 0 : index
    %181 = vector.load %arg7[%c0_105, %c0_106] : memref<4x1xf32, #tpu.memory_space<vmem>>, vector<4x1xf32>
    %182 = arith.mulf %175, %175 : vector<4x1024xf32>
    %cst_107 = arith.constant dense<0.000000e+00> : vector<4xf32>
    %183 = vector.multi_reduction <add>, %182, %cst_107 [1] : vector<4x1024xf32> to vector<4xf32>
    %184 = vector.shape_cast %183 : vector<4xf32> to vector<4x1xf32>
    %185 = arith.addf %181, %184 : vector<4x1xf32>
    %c0_108 = arith.constant 0 : index
    %c0_109 = arith.constant 0 : index
    %186 = vector.load %arg7[%c0_108, %c0_109] : memref<4x1xf32, #tpu.memory_space<vmem>>, vector<4x1xf32>
    tpu.vector_store %arg7[%c0_108, %c0_109], %185 {strides = array<i32>} : memref<4x1xf32, #tpu.memory_space<vmem>>, vector<4x1xf32>,
    %c0_i32_110 = arith.constant 0 : i32
    %187 = arith.cmpi eq, %arg0, %c0_i32_110 : i32
    %188 = arith.extui %187 : i1 to i32
    %c0_i32_111 = arith.constant 0 : i32
    %189 = arith.cmpi ne, %188, %c0_i32_111 : i32
    scf.if %189 {
      %c0_112 = arith.constant 0 : index
      %c0_113 = arith.constant 0 : index
      %190 = vector.load %arg6[%c0_112, %c0_113] : memref<4x1xf32, #tpu.memory_space<vmem>>, vector<4x1xf32>
      %cst_114 = arith.constant 1.48148145E-4 : f32
      %191 = vector.broadcast %cst_114 : f32 to vector<4x1xf32>
      %192 = arith.mulf %190, %191 : vector<4x1xf32>
      %c0_115 = arith.constant 0 : index
      %c0_116 = arith.constant 0 : index
      %193 = vector.load %arg7[%c0_115, %c0_116] : memref<4x1xf32, #tpu.memory_space<vmem>>, vector<4x1xf32>
      %cst_117 = arith.constant 1.48148145E-4 : f32
      %194 = vector.broadcast %cst_117 : f32 to vector<4x1xf32>
      %195 = arith.mulf %193, %194 : vector<4x1xf32>
      %196 = arith.mulf %192, %192 : vector<4x1xf32>
      %197 = arith.subf %195, %196 : vector<4x1xf32>
      %cst_118 = arith.constant 0.000000e+00 : f32
      %198 = vector.broadcast %cst_118 : f32 to vector<4x1xf32>
      %199 = arith.maximumf %197, %198 : vector<4x1xf32>
      %c0_119 = arith.constant 0 : index
      %c0_120 = arith.constant 0 : index
      %200 = vector.load %arg3[%c0_119, %c0_120] : memref<4x2xf32, #tpu.memory_space<vmem>>, vector<4x1xf32>
      %cst_121 = arith.constant 9.99999974E-6 : f32
      %201 = vector.broadcast %cst_121 : f32 to vector<4x1xf32>
      %202 = arith.addf %199, %201 : vector<4x1xf32>
      %203 = math.rsqrt %202 : vector<4x1xf32>
      %204 = arith.mulf %200, %203 : vector<4x1xf32>
      %c0_122 = arith.constant 0 : index
      %c1 = arith.constant 1 : index
      %205 = vector.load %arg3[%c0_122, %c1] : memref<4x2xf32, #tpu.memory_space<vmem>>, vector<4x1xf32>
      %206 = arith.mulf %192, %204 : vector<4x1xf32>
      %207 = arith.subf %205, %206 : vector<4x1xf32>
      %208 = tpu.iota {dimensions = array<i32: 1>} : vector<4x2xi32>
      %c0_i32_123 = arith.constant 0 : i32
      %209 = vector.broadcast %c0_i32_123 : i32 to vector<4x2xi32>
      %210 = arith.cmpi eq, %208, %209 : vector<4x2xi32>
      %211 = vector.shape_cast %204 : vector<4x1xf32> to vector<4x1xf32>
      %212 = vector.broadcast %211 : vector<4x1xf32> to vector<4x2xf32>
      %213 = vector.shape_cast %207 : vector<4x1xf32> to vector<4x1xf32>
      %214 = vector.broadcast %213 : vector<4x1xf32> to vector<4x2xf32>
      %215 = arith.select %210, %212, %214 : vector<4x2xi1>, vector<4x2xf32>
      %c0_124 = arith.constant 0 : index
      %c0_125 = arith.constant 0 : index
      %216 = vector.load %arg5[%c0_124, %c0_125] : memref<4x2xf32, #tpu.memory_space<vmem>>, vector<4x2xf32>
      tpu.vector_store %arg5[%c0_124, %c0_125], %215 {strides = array<i32>} : memref<4x2xf32, #tpu.memory_space<vmem>>, vector<4x2xf32>,
    } else {
    }
    return
  }
  func.func @transform_0(%arg0: i32) -> (i32, i32) {
    %c0_i32 = arith.constant 0 : i32
    %c0_i32_0 = arith.constant 0 : i32
    %c0_i32_1 = arith.constant 0 : i32
    return %c0_i32, %c0_i32_0 : i32, i32
  }
  func.func @transform_1(%arg0: i32) -> (i32, i32) {
    %c0_i32 = arith.constant 0 : i32
    %c0_i32_0 = arith.constant 0 : i32
    return %c0_i32, %arg0 : i32, i32
  }
  func.func @transform_2(%arg0: i32) -> (i32, i32) {
    %c0_i32 = arith.constant 0 : i32
    %c0_i32_0 = arith.constant 0 : i32
    %c0_i32_1 = arith.constant 0 : i32
    return %c0_i32, %c0_i32_0 : i32, i32
  }
  func.func @transform_3(%arg0: i32) -> (i32, i32) {
    %c0_i32 = arith.constant 0 : i32
    %c0_i32_0 = arith.constant 0 : i32
    return %c0_i32, %arg0 : i32, i32
  }
  func.func @transform_4(%arg0: i32) -> (i32, i32) {
    %c0_i32 = arith.constant 0 : i32
    %c0_i32_0 = arith.constant 0 : i32
    %c0_i32_1 = arith.constant 0 : i32
    return %c0_i32, %c0_i32_0 : i32, i32
  }
}

</mosaic_0001>

<bundles_post_ra>
// kernel: unet_innermost_forward.2
= control target key start
LH: loop header
LB: loop body
LE: loop exit
PB: predicated region body
PF: predicated region fallthrough
CT: control target
= control target key end

     0   :  { %v655_v3 = vmov 0   ;;  %vm345_vm0 = vcmask 1045504   ;;  %vm346_vm1 = vcmask 1046528   ;;  %v656_v45 = vmov 65535   ;;  %s879_s1 = inlined_call_operand.vmem [shape: bf16[109,1024], index: 1, kind: input, shape index: {}]   ;;  %s880_s0 = inlined_call_operand.vmem [shape: bf16[8,109], index: 0, kind: input, shape index: {}]   ;;  %s881_s2 = inlined_call_operand.vmem [shape: bf16[8,1024], index: 2, kind: output, shape index: {}]  }
   0x1   :  { %v13_v0 = vld [vmem:[%s879_s1] sm:$0xff]  ;;  %v14_v2 = vld [vmem:[%s879_s1 + $0x8] sm:$0xff]  ;;  %405 = vmatprep.mubr.bf16.mxu0 %v655_v3  ;;  %446 = vmatprep.mubr.bf16.mxu1 %v655_v3  ;;  %v347_v46 = vsel %vm345_vm0, 4294967295, %v656_v45  ;;  %v15_v62 = vld [vmem:[%s879_s1 + $0x10] sm:$0xff]  ;;  %vm341_vm2 = vcmask 891904  }
   0x2   :  { %v17_v1 = vld [vmem:[%s879_s1 + $0x20] sm:$0xff]  ;;  %v18_v5 = vld [vmem:[%s879_s1 + $0x28] sm:$0xff]  ;;  %v758_v54 = vsel %vm346_vm1, %v347_v46, 0  ;;  %v19_v63 = vld [vmem:[%s879_s1 + $0x30] sm:$0xff] }
   0x3   :  { %v586_v4 = vcombine.high %v13_v0, %v17_v1  ;;  %v585_v6 = vcombine.low %v13_v0, %v17_v1  ;;  %v21_v7 = vld [vmem:[%s879_s1 + $0x40] sm:$0xff]  ;;  %v588_v9 = vcombine.high %v14_v2, %v18_v5  ;;  %v587_v10 = vcombine.low %v14_v2, %v18_v5  ;;  %v22_v12 = vld [vmem:[%s879_s1 + $0x48] sm:$0xff]  ;;  %v16_v0 = vld [vmem:[%s879_s1 + $0x18] sm:$0xff] }
   0x4   :  { %v25_v8 = vld [vmem:[%s879_s1 + $0x60] sm:$0xff]  ;;  %v26_v13 = vld [vmem:[%s879_s1 + $0x68] sm:$0xff]  ;;  %v20_v1 = vld [vmem:[%s879_s1 + $0x38] sm:$0xff]  ;;  %v590_v5 = vcombine.high %v15_v62, %v19_v63 }
   0x5   :  { %v594_v11 = vcombine.high %v21_v7, %v25_v8  ;;  %v29_v14 = vld [vmem:[%s879_s1 + $0x80] sm:$0xff]  ;;  %373 = vmatprep.subr.bf16.mxu0 %v586_v4  ;;  %v596_v15 = vcombine.high %v22_v12, %v26_v13  ;;  %v30_v17 = vld [vmem:[%s879_s1 + $0x88] sm:$0xff]  ;;  %414 = vmatprep.subr.bf16.mxu1 %v588_v9  ;;  %v593_v19 = vcombine.low %v21_v7, %v25_v8  ;;  %v23_v7 = vld [vmem:[%s879_s1 + $0x50] sm:$0xff] }
   0x6   :  { %v33_v16 = vld [vmem:[%s879_s1 + $0xa0] sm:$0xff]  ;;  %v34_v18 = vld [vmem:[%s879_s1 + $0xa8] sm:$0xff]  ;;  %374 = vmatpush1.bf16.msra.mxu0 %v585_v6  ;;  %415 = vmatpush1.bf16.msra.mxu1 %v587_v10  ;;  %v595_v20 = vcombine.low %v22_v12, %v26_v13  ;;  %v592_v6 = vcombine.high %v16_v0, %v20_v1  ;;  %v27_v8 = vld [vmem:[%s879_s1 + $0x70] sm:$0xff]  ;;  %v589_v12 = vcombine.low %v15_v62, %v19_v63 }
   0x7   :  { %375 = vmatprep.subr.bf16.mxu0 %v594_v11  ;;  %v602_v21 = vcombine.high %v29_v14, %v33_v16  ;;  %416 = vmatprep.subr.bf16.mxu1 %v596_v15  ;;  %v604_v22 = vcombine.high %v30_v17, %v34_v18  ;;  %v37_v23 = vld [vmem:[%s879_s1 + $0xc0] sm:$0xff]  ;;  %v38_v25 = vld [vmem:[%s879_s1 + $0xc8] sm:$0xff]  ;;  %v601_v27 = vcombine.low %v29_v14, %v33_v16  ;;  %v24_v9 = vld [vmem:[%s879_s1 + $0x58] sm:$0xff] }
   0x8   :  { %v41_v24 = vld [vmem:[%s879_s1 + $0xe0] sm:$0xff]  ;;  %v42_v26 = vld [vmem:[%s879_s1 + $0xe8] sm:$0xff]  ;;  %v603_v28 = vcombine.low %v30_v17, %v34_v18  ;;  %v28_v10 = vld [vmem:[%s879_s1 + $0x78] sm:$0xff]  ;;  %v591_v13 = vcombine.low %v16_v0, %v20_v1  ;;  %v598_v14 = vcombine.high %v23_v7, %v27_v8 }
   0x9   :  { %v610_v29 = vcombine.high %v37_v23, %v41_v24  ;;  %v612_v30 = vcombine.high %v38_v25, %v42_v26  ;;  %v45_v31 = vld [vmem:[%s879_s1 + $0x100] sm:$0xff]  ;;  %v46_v33 = vld [vmem:[%s879_s1 + $0x108] sm:$0xff]  ;;  %v609_v35 = vcombine.low %v37_v23, %v41_v24  ;;  %v611_v36 = vcombine.low %v38_v25, %v42_v26  ;;  %v31_v16 = vld [vmem:[%s879_s1 + $0x90] sm:$0xff] }
   0xa   :  { %376 = vmatpush1.bf16.msra.mxu0 %v593_v19  ;;  %417 = vmatpush1.bf16.msra.mxu1 %v595_v20  ;;  %v49_v32 = vld [vmem:[%s879_s1 + $0x120] sm:$0xff]  ;;  %v50_v34 = vld [vmem:[%s879_s1 + $0x128] sm:$0xff]  ;;  %v600_v15 = vcombine.high %v24_v9, %v28_v10  ;;  %v35_v17 = vld [vmem:[%s879_s1 + $0xb0] sm:$0xff]  ;;  %v597_v20 = vcombine.low %v23_v7, %v27_v8 }
   0xb   :  { %377 = vmatprep.subr.bf16.mxu0 %v602_v21  ;;  %418 = vmatprep.subr.bf16.mxu1 %v604_v22  ;;  %v618_v37 = vcombine.high %v45_v31, %v49_v32  ;;  %v53_v38 = vld [vmem:[%s879_s1 + $0x140] sm:$0xff]  ;;  %v620_v40 = vcombine.high %v46_v33, %v50_v34  ;;  %v54_v41 = vld [vmem:[%s879_s1 + $0x148] sm:$0xff]  ;;  %v617_v49 = vcombine.low %v45_v31, %v49_v32  ;;  %v32_v18 = vld [vmem:[%s879_s1 + $0x98] sm:$0xff] }
   0xc   :  { %v57_v39 = vld [vmem:[%s879_s1 + $0x160] sm:$0xff]  ;;  %v58_v44 = vld [vmem:[%s879_s1 + $0x168] sm:$0xff]  ;;  %v619_v50 = vcombine.low %v46_v33, %v50_v34  ;;  %v36_v19 = vld [vmem:[%s879_s1 + $0xb8] sm:$0xff]  ;;  %v599_v21 = vcombine.low %v24_v9, %v28_v10  ;;  %v606_v22 = vcombine.high %v31_v16, %v35_v17 }
   0xd   :  { %v61_v42 = vld [vmem:[%s879_s1 + $0x180] sm:$0xff]  ;;  %v62_v47 = vld [vmem:[%s879_s1 + $0x188] sm:$0xff]  ;;  %v626_v51 = vcombine.high %v53_v38, %v57_v39  ;;  %v628_v53 = vcombine.high %v54_v41, %v58_v44  ;;  %v625_v56 = vcombine.low %v53_v38, %v57_v39  ;;  %v627_v58 = vcombine.low %v54_v41, %v58_v44  ;;  %v39_v24 = vld [vmem:[%s879_s1 + $0xd0] sm:$0xff] }
   0xe   :  { %378 = vmatpush1.bf16.msra.mxu0 %v601_v27  ;;  %419 = vmatpush1.bf16.msra.mxu1 %v603_v28  ;;  %v65_v43 = vld [vmem:[%s879_s1 + $0x1a0] sm:$0x77]  ;;  %v66_v48 = vld [vmem:[%s879_s1 + $0x1a8] sm:$0x77]  ;;  %v608_v23 = vcombine.high %v32_v18, %v36_v19  ;;  %v43_v25 = vld [vmem:[%s879_s1 + $0xf0] sm:$0xff]  ;;  %v605_v28 = vcombine.low %v31_v16, %v35_v17 }
   0xf   :  { %379 = vmatprep.subr.bf16.mxu0 %v610_v29  ;;  %420 = vmatprep.subr.bf16.mxu1 %v612_v30  ;;  %v634_v52 = vcombine.high %v61_v42, %v65_v43  ;;  %v636_v55 = vcombine.high %v62_v47, %v66_v48  ;;  %v633_v57 = vcombine.low %v61_v42, %v65_v43  ;;  %v791_v11 = vld [vmem:[%s880_s0] sm:$0xf]  ;;  %v40_v26 = vld [vmem:[%s879_s1 + $0xd8] sm:$0xff]  ;;  %v47_v32 = vld [vmem:[%s879_s1 + $0x110] sm:$0xff] }
  0x10   :  { %v635_v60 = vcombine.low %v62_v47, %v66_v48  ;;  %v44_v27 = vld [vmem:[%s879_s1 + $0xf8] sm:$0xff]  ;;  %v607_v29 = vcombine.low %v32_v18, %v36_v19  ;;  %v614_v30 = vcombine.high %v39_v24, %v43_v25  ;;  %v51_v33 = vld [vmem:[%s879_s1 + $0x130] sm:$0xff] }
  0x11   :  { %v353_v59 = vand.u32 %v634_v52, %v758_v54  ;;  %v359_v61 = vand.u32 %v636_v55, %v758_v54  ;;  %v350_v2 = vand.u32 %v633_v57, %v758_v54  ;;  %v616_v31 = vcombine.high %v40_v26, %v44_v27  ;;  %v52_v34 = vld [vmem:[%s879_s1 + $0x138] sm:$0xff]  ;;  %v55_v38 = vld [vmem:[%s879_s1 + $0x150] sm:$0xff] }
  0x12   :  { %380 = vmatpush1.bf16.msra.mxu0 %v609_v35  ;;  %421 = vmatpush1.bf16.msra.mxu1 %v611_v36  ;;  %v356_v4 = vand.u32 %v635_v60, %v758_v54  ;;  %v613_v35 = vcombine.low %v39_v24, %v43_v25  ;;  %v615_v36 = vcombine.low %v40_v26, %v44_v27  ;;  %v59_v39 = vld [vmem:[%s879_s1 + $0x170] sm:$0xff]  ;;  %v56_v41 = vld [vmem:[%s879_s1 + $0x158] sm:$0xff] }
  0x13   :  { %381 = vmatprep.subr.bf16.mxu0 %v618_v37  ;;  %422 = vmatprep.subr.bf16.mxu1 %v620_v40  ;;  %v622_v37 = vcombine.high %v47_v32, %v51_v33  ;;  %v63_v42 = vld [vmem:[%s879_s1 + $0x190] sm:$0xff]  ;;  %v60_v44 = vld [vmem:[%s879_s1 + $0x178] sm:$0xff]  ;;  %v621_v47 = vcombine.low %v47_v32, %v51_v33 }
  0x14   :  { %v67_v43 = vld [vmem:[%s879_s1 + $0x1b0] sm:$0x77]  ;;  %v64_v45 = vld [vmem:[%s879_s1 + $0x198] sm:$0xff] }
  0x15   :  { %v68_v46 = vld [vmem:[%s879_s1 + $0x1b8] sm:$0x77]  ;;  %v637_v55 = vcombine.low %v63_v42, %v67_v43 }
  0x16   :  { %382 = vmatpush1.bf16.msra.mxu0 %v617_v49  ;;  %423 = vmatpush1.bf16.msra.mxu1 %v619_v50  ;;  %v630_v49 = vcombine.high %v55_v38, %v59_v39  ;;  %v638_v50 = vcombine.high %v63_v42, %v67_v43  ;;  %v640_v52 = vcombine.high %v64_v45, %v68_v46 }
  0x17   :  { %383 = vmatprep.subr.bf16.mxu0 %v626_v51  ;;  %424 = vmatprep.subr.bf16.mxu1 %v628_v53  ;;  %v632_v51 = vcombine.high %v56_v41, %v60_v44  ;;  %v629_v53 = vcombine.low %v55_v38, %v59_v39  ;;  %v362_v60 = vand.u32 %v637_v55, %v758_v54 }
  0x18   :  { %v365_v57 = vand.u32 %v638_v50, %v758_v54 }
  0x1a   :  { %384 = vmatpush1.bf16.msra.mxu0 %v625_v56  ;;  %425 = vmatpush1.bf16.msra.mxu1 %v627_v58  ;;  %v631_v56 = vcombine.low %v56_v41, %v60_v44  ;;  %v639_v58 = vcombine.low %v64_v45, %v68_v46 }
  0x1b   :  { %385 = vmatprep.subr.bf16.mxu0 %v353_v59  ;;  %426 = vmatprep.subr.bf16.mxu1 %v359_v61  ;;  %v371_v59 = vand.u32 %v640_v52, %v758_v54 }
  0x1c   :  { %v368_v61 = vand.u32 %v639_v58, %v758_v54 }
  0x1e   :  { %386 = vmatpush1.bf16.msra.mxu0 %v350_v2  ;;  %427 = vmatpush1.bf16.msra.mxu1 %v356_v4 }
  0x1f   :  { %455 = vmatprep.subr.bf16.mxu0 %v590_v5  ;;  %496 = vmatprep.subr.bf16.mxu1 %v592_v6 }
  0x21   :  { %641 = vmatmul.mubr.msk.bf16.vlgmr.msra.gmra.mrb[0].mxu0 %vm341_vm2, %v791_v11  ;;  %642 = vmatmul.mubr.msk.bf16.vlgmr.msra.gmra.mrb[0].mxu1 %vm341_vm2, %v791_v11 }
  0x22   :  { %456 = vmatpush1.bf16.msra.mxu0 %v589_v12  ;;  %497 = vmatpush1.bf16.msra.mxu1 %v591_v13 }
  0x23   :  { %457 = vmatprep.subr.bf16.mxu0 %v598_v14  ;;  %498 = vmatprep.subr.bf16.mxu1 %v600_v15 }
  0x24   :  { %487 = vmatprep.mubr.bf16.mxu0 %v655_v3  ;;  %528 = vmatprep.mubr.bf16.mxu1 %v655_v3  ;;  %v48_v3 = vld [vmem:[%s879_s1 + $0x118] sm:$0xff] }
  0x25   :  { %v624_v40 = vcombine.high %v48_v3, %v52_v34  ;;  %v623_v48 = vcombine.low %v48_v3, %v52_v34 }
  0x26   :  { %458 = vmatpush1.bf16.msra.mxu0 %v597_v20  ;;  %499 = vmatpush1.bf16.msra.mxu1 %v599_v21 }
  0x27   :  { %459 = vmatprep.subr.bf16.mxu0 %v606_v22  ;;  %500 = vmatprep.subr.bf16.mxu1 %v608_v23 }
  0x2a   :  { %460 = vmatpush1.bf16.msra.mxu0 %v605_v28  ;;  %501 = vmatpush1.bf16.msra.mxu1 %v607_v29 }
  0x2b   :  { %461 = vmatprep.subr.bf16.mxu0 %v614_v30  ;;  %502 = vmatprep.subr.bf16.mxu1 %v616_v31 }
  0x2e   :  { %462 = vmatpush1.bf16.msra.mxu0 %v613_v35  ;;  %503 = vmatpush1.bf16.msra.mxu1 %v615_v36 }
  0x2f   :  { %463 = vmatprep.subr.bf16.mxu0 %v622_v37  ;;  %504 = vmatprep.subr.bf16.mxu1 %v624_v40 }
  0x32   :  { %464 = vmatpush1.bf16.msra.mxu0 %v621_v47  ;;  %505 = vmatpush1.bf16.msra.mxu1 %v623_v48 }
  0x33   :  { %465 = vmatprep.subr.bf16.mxu0 %v630_v49  ;;  %506 = vmatprep.subr.bf16.mxu1 %v632_v51 }
  0x36   :  { %466 = vmatpush1.bf16.msra.mxu0 %v629_v53  ;;  %507 = vmatpush1.bf16.msra.mxu1 %v631_v56 }
  0x37   :  { %467 = vmatprep.subr.bf16.mxu0 %v365_v57  ;;  %508 = vmatprep.subr.bf16.mxu1 %v371_v59 }
  0x3a   :  { %468 = vmatpush1.bf16.msra.mxu0 %v362_v60  ;;  %509 = vmatpush1.bf16.msra.mxu1 %v368_v61 }
  0x3d   :  { %643 = vmatmul.mubr.msk.bf16.vlgmr.msra.gmra.mrb[4].mxu0 %vm341_vm2, %v791_v11  ;;  %644 = vmatmul.mubr.msk.bf16.vlgmr.msra.gmra.mrb[4].mxu1 %vm341_vm2, %v791_v11 }
  0xf4   :  { %v407_v62 = vpop.f32.mrb[0].mxu0  ;;  %v448_v0 = vpop.f32.mrb[0].mxu1 }
  0xf5   :  { %v537_v63 = vmax.f32 %v407_v62, 0.0  ;;  %v409_v1 = vpop.f32.mrb[1].mxu0  ;;  %v539_v2 = vmax.f32 %v448_v0, 0.0  ;;  %v450_v5 = vpop.f32.mrb[1].mxu1 }
  0xf6   :  { %v538_v4 = vmax.f32 %v409_v1, 0.0  ;;  %v411_v6 = vpop.f32.mrb[2].mxu0  ;;  %v540_v7 = vmax.f32 %v450_v5, 0.0  ;;  %v452_v8 = vpop.f32.mrb[2].mxu1 }
  0xf7   :  { %v412_v54 = vpop.f32.mrb[3].mxu0  ;;  %v453_v10 = vpop.f32.mrb[3].mxu1 }
  0xf8   :  { %v649_v9 = vpack.c.bf16 %v538_v4, %v537_v63  ;;  %v650_v12 = vpack.c.bf16 %v540_v7, %v539_v2 }
  0xfa   :  { %577 = vst [vmem:[%s881_s2] sm:$0xff] %v649_v9  ;;  %578 = vst [vmem:[%s881_s2 + $0x8] sm:$0xff] %v650_v12 }
 0x110   :  { %v489_v11 = vpop.f32.mrb[4].mxu0  ;;  %v530_v14 = vpop.f32.mrb[4].mxu1 }
 0x111   :  { %v541_v13 = vmax.f32 %v489_v11, 0.0  ;;  %v491_v15 = vpop.f32.mrb[5].mxu0  ;;  %v543_v16 = vmax.f32 %v530_v14, 0.0  ;;  %v532_v18 = vpop.f32.mrb[5].mxu1 }
 0x112   :  { %v542_v17 = vmax.f32 %v491_v15, 0.0  ;;  %v493_v19 = vpop.f32.mrb[6].mxu0  ;;  %v544_v20 = vmax.f32 %v532_v18, 0.0  ;;  %v534_v21 = vpop.f32.mrb[6].mxu1 }
 0x113   :  { %v494_v22 = vpop.f32.mrb[7].mxu0  ;;  %v535_v24 = vpop.f32.mrb[7].mxu1 }
 0x114   :  { %v651_v23 = vpack.c.bf16 %v542_v17, %v541_v13  ;;  %v652_v25 = vpack.c.bf16 %v544_v20, %v543_v16 }
 0x116   :  { %579 = vst [vmem:[%s881_s2 + $0x10] sm:$0xff] %v651_v23  ;;  %580 = vst [vmem:[%s881_s2 + $0x18] sm:$0xff] %v652_v25 }

// kernel: tile.18
= control target key start
LH: loop header
LB: loop body
LE: loop exit
PB: predicated region body
PF: predicated region fallthrough
CT: control target
= control target key end

     0   :  { %s22_s0 = inlined_call_operand.vmem [shape: f32[4], index: 0, kind: input, shape index: {}]   ;;  %s23_s1 = inlined_call_operand.vmem [shape: f32[8,4], index: 1, kind: output, shape index: {}]  }
   0x1   :  { %v4_v0 = vld [vmem:[%s22_s0] ss:$0 sm:$0xff] }
   0x2   :  { %5 = vst [vmem:[%s23_s1] sm:$0xff] %v4_v0 }

// kernel: mul.9
= control target key start
LH: loop header
LB: loop body
LE: loop exit
PB: predicated region body
PF: predicated region fallthrough
CT: control target
= control target key end

     0   :  { %s67_s10 = smov 28   ;;  %s68_s11 = smov 20   ;;  %vm3_vm0 = vcmask 31744   ;;  %vm9_vm1 = vcmask 261344   ;;  %vm15_vm2 = vcmask 228544   ;;  %vm21_vm3 = vcmask 195744   ;;  %s111_s0 = inlined_call_operand.vmem [shape: f32[8,4], index: 0, kind: input, shape index: {}]   ;;  %s112_s1 = inlined_call_operand.vmem [shape: f32[32], index: 1, kind: output, shape index: {}]  }
   0x1   :  { %v53_v0 = vld [vmem:[%s111_s0 + $0x7] sm:$0x1]   ;;  %v55_v1 = vld [vmem:[%s111_s0 + $0x5] sm:$0x1]   ;;  %v54_v2 = vld [vmem:[%s111_s0 + $0x6] sm:$0x1]  }
   0x2   :  { %7 = vrot.lane.b32.xlu0 %v53_v0, %s67_s10  ;;  %19 = vrot.lane.b32.xlu1 %v55_v1, %s68_s11  ;;  %v56_v3 = vld [vmem:[%s111_s0 + $0x4] sm:$0x1]   ;;  %v2_v4 = vld [vmem:[%s111_s0] sm:$0x1]   ;;  %s69_s18 = smov 24   ;;  %s70_s19 = smov 16  }
   0x3   :  { %4 = vst.msk [vmem:[#allocation0] sm:$0x1] %vm3_vm0, %v2_v4   ;;  %v57_v5 = vld [vmem:[%s111_s0 + $0x3] sm:$0x1]   ;;  %v58_v6 = vld [vmem:[%s111_s0 + $0x2] sm:$0x1]  }
   0x4   :  { %s71_s24 = smov 12   ;;  %s72_s25 = smov 8   ;;  %v59_v7 = vld [vmem:[%s111_s0 + $0x1] sm:$0x1]   ;;  %vm27_vm4 = vcmask 162944   ;;  %vm33_vm5 = vcmask 130144  }
   0x5   :  { %s73_s0 = smov 4   ;;  %vm39_vm6 = vcmask 97344   ;;  %vm45_vm7 = vcmask 64544  }
   0x6   :  { %13 = vrot.lane.b32.xlu0 %v54_v2, %s69_s18  ;;  %25 = vrot.lane.b32.xlu1 %v56_v3, %s70_s19 }
   0xa   :  { %31 = vrot.lane.b32.xlu0 %v57_v5, %s71_s24  ;;  %37 = vrot.lane.b32.xlu1 %v58_v6, %s72_s25 }
   0xe   :  { %43 = vrot.lane.b32.xlu0 %v59_v7, %s73_s0 }
  0x74   :  { %v8_v8 = vpop.permute.xlu0 %7   ;;  %v20_v9 = vpop.permute.xlu1 %19  }
  0x75   :  { %10 = vst.msk [vmem:[#allocation0] sm:$0x1] %vm9_vm1, %v8_v8  }
  0x78   :  { %v14_v10 = vpop.permute.xlu0 %13   ;;  %v26_v11 = vpop.permute.xlu1 %25  }
  0x79   :  { %16 = vst.msk [vmem:[#allocation0] sm:$0x1] %vm15_vm2, %v14_v10  }
  0x7a   :  { %22 = vst.msk [vmem:[#allocation0] sm:$0x1] %vm21_vm3, %v20_v9  }
  0x7b   :  { %28 = vst.msk [vmem:[#allocation0] sm:$0x1] %vm27_vm4, %v26_v11  }
  0x7c   :  { %v32_v12 = vpop.permute.xlu0 %31   ;;  %v38_v13 = vpop.permute.xlu1 %37  }
  0x7d   :  { %34 = vst.msk [vmem:[#allocation0] sm:$0x1] %vm33_vm5, %v32_v12  }
  0x7e   :  { %40 = vst.msk [vmem:[#allocation0] sm:$0x1] %vm39_vm6, %v38_v13  }
  0x80   :  { %v44_v14 = vpop.permute.xlu0 %43  }
  0x81   :  { %46 = vst.msk [vmem:[#allocation0] sm:$0x1] %vm45_vm7, %v44_v14  }
  0x88   :  { %v50_v15 = vld [vmem:[#allocation0] sm:$0x1] }
  0x89   :  { %52 = vst [vmem:[%s112_s1] sm:$0x1] %v50_v15 }

// kernel: unet_innermost_forward.3
= control target key start
LH: loop header
LB: loop body
LE: loop exit
PB: predicated region body
PF: predicated region fallthrough
CT: control target
= control target key end

     0   :  { %v1393_v3 = vmov 0   ;;  %vm261_vm0 = vcmask 1040384   ;;  %vm254_vm1 = vcmask 531456   ;;  %vm2636_vm2 = vcmask 3072   ;;  %s1396_s20 = smov 1   ;;  %s2631_s1 = inlined_call_operand.vmem [shape: bf16[65,1024], index: 1, kind: input, shape index: {}]   ;;  %s2632_s0 = inlined_call_operand.vmem [shape: bf16[32,65], index: 0, kind: input, shape index: {}]   ;;  %s2633_s3 = inlined_call_operand.vmem [shape: f32[32,1024], index: 3, kind: output, shape index: {0}]   ;;  %s2634_s2 = inlined_call_operand.vmem [shape: f32[4,2], index: 2, kind: input, shape index: {}]   ;;  %s2635_s4 = inlined_call_operand.vmem [shape: f32[4,2], index: 4, kind: output, shape index: {1}]  }
   0x1   :  { %v28_v0 = vld [vmem:[%s2631_s1] sm:$0xff]  ;;  %v29_v2 = vld [vmem:[%s2631_s1 + $0x8] sm:$0xff]  ;;  %320 = vmatprep.mubr.bf16.mxu0 %v1393_v3  ;;  %373 = vmatprep.mubr.bf16.mxu1 %v1393_v3  ;;  %v1480_v34 = vsel %vm261_vm0, 65535, %v1393_v3  ;;  %v30_v42 = vld [vmem:[%s2631_s1 + $0x10] sm:$0xff]  ;;  %vm624_vm3 = vcmask 1043456   ;;  %vm714_vm6 = vcmask 1047556  }
   0x2   :  { %v32_v1 = vld [vmem:[%s2631_s1 + $0x20] sm:$0xff]  ;;  %v33_v6 = vld [vmem:[%s2631_s1 + $0x28] sm:$0xff]  ;;  %1378 = vset.pattern.permute.xlu1 %v1393_v3  ;;  %v34_v43 = vld [vmem:[%s2631_s1 + $0x30] sm:$0xff] }
   0x3   :  { %v1327_v4 = vcombine.high %v28_v0, %v32_v1  ;;  %v1326_v5 = vcombine.low %v28_v0, %v32_v1  ;;  %v36_v7 = vld [vmem:[%s2631_s1 + $0x40] sm:$0xff]  ;;  %v1329_v9 = vcombine.high %v29_v2, %v33_v6  ;;  %v1328_v10 = vcombine.low %v29_v2, %v33_v6  ;;  %v37_v12 = vld [vmem:[%s2631_s1 + $0x48] sm:$0xff]  ;;  %v31_v44 = vld [vmem:[%s2631_s1 + $0x18] sm:$0xff] }
   0x4   :  { %v40_v8 = vld [vmem:[%s2631_s1 + $0x60] sm:$0xff]  ;;  %v41_v13 = vld [vmem:[%s2631_s1 + $0x68] sm:$0xff]  ;;  %v35_v45 = vld [vmem:[%s2631_s1 + $0x38] sm:$0xff]  ;;  %v1331_v48 = vcombine.high %v30_v42, %v34_v43  ;;  %v1330_v55 = vcombine.low %v30_v42, %v34_v43 }
   0x5   :  { %v1335_v11 = vcombine.high %v36_v7, %v40_v8  ;;  %v44_v14 = vld [vmem:[%s2631_s1 + $0x80] sm:$0xff]  ;;  %288 = vmatprep.subr.bf16.mxu0 %v1327_v4  ;;  %v1337_v15 = vcombine.high %v37_v12, %v41_v13  ;;  %v45_v17 = vld [vmem:[%s2631_s1 + $0x88] sm:$0xff]  ;;  %341 = vmatprep.subr.bf16.mxu1 %v1329_v9  ;;  %v1334_v19 = vcombine.low %v36_v7, %v40_v8  ;;  %v38_v50 = vld [vmem:[%s2631_s1 + $0x50] sm:$0xff] }
   0x6   :  { %v48_v16 = vld [vmem:[%s2631_s1 + $0xa0] sm:$0xff]  ;;  %v49_v18 = vld [vmem:[%s2631_s1 + $0xa8] sm:$0xff]  ;;  %289 = vmatpush1.bf16.msra.mxu0 %v1326_v5  ;;  %342 = vmatpush1.bf16.msra.mxu1 %v1328_v10  ;;  %v1336_v20 = vcombine.low %v37_v12, %v41_v13  ;;  %v1333_v49 = vcombine.high %v31_v44, %v35_v45  ;;  %v42_v51 = vld [vmem:[%s2631_s1 + $0x70] sm:$0xff]  ;;  %v1332_v56 = vcombine.low %v31_v44, %v35_v45 }
   0x7   :  { %290 = vmatprep.subr.bf16.mxu0 %v1335_v11  ;;  %v1343_v21 = vcombine.high %v44_v14, %v48_v16  ;;  %v52_v22 = vld [vmem:[%s2631_s1 + $0xc0] sm:$0xff]  ;;  %343 = vmatprep.subr.bf16.mxu1 %v1337_v15  ;;  %v1345_v24 = vcombine.high %v45_v17, %v49_v18  ;;  %v53_v26 = vld [vmem:[%s2631_s1 + $0xc8] sm:$0xff]  ;;  %v1342_v29 = vcombine.low %v44_v14, %v48_v16  ;;  %v39_v53 = vld [vmem:[%s2631_s1 + $0x58] sm:$0xff] }
   0x8   :  { %v56_v23 = vld [vmem:[%s2631_s1 + $0xe0] sm:$0xff]  ;;  %v57_v27 = vld [vmem:[%s2631_s1 + $0xe8] sm:$0xff]  ;;  %v1344_v30 = vcombine.low %v45_v17, %v49_v18  ;;  %v43_v54 = vld [vmem:[%s2631_s1 + $0x78] sm:$0xff]  ;;  %v1339_v57 = vcombine.high %v38_v50, %v42_v51  ;;  %v1338_v63 = vcombine.low %v38_v50, %v42_v51 }
   0x9   :  { %v60_v25 = vld [vmem:[%s2631_s1 + $0x100] sm:$0x11]  ;;  %v61_v28 = vld [vmem:[%s2631_s1 + $0x108] sm:$0x11]  ;;  %v1351_v31 = vcombine.high %v52_v22, %v56_v23  ;;  %v1353_v33 = vcombine.high %v53_v26, %v57_v27  ;;  %v1350_v36 = vcombine.low %v52_v22, %v56_v23  ;;  %v1352_v38 = vcombine.low %v53_v26, %v57_v27  ;;  %v46_v59 = vld [vmem:[%s2631_s1 + $0x90] sm:$0xff] }
   0xa   :  { %291 = vmatpush1.bf16.msra.mxu0 %v1334_v19  ;;  %344 = vmatpush1.bf16.msra.mxu1 %v1336_v20  ;;  %v1359_v32 = vcombine.high %v60_v25, %v60_v25  ;;  %v1361_v35 = vcombine.high %v61_v28, %v61_v28  ;;  %v1358_v37 = vcombine.low %v60_v25, %v60_v25  ;;  %v1507_v52 = vld [vmem:[%s2632_s0] sm:$0xff]   ;;  %v50_v60 = vld [vmem:[%s2631_s1 + $0xb0] sm:$0xff]  ;;  %v47_v61 = vld [vmem:[%s2631_s1 + $0x98] sm:$0xff]  ;;  %v1394_v25 = vmov 0.0  }
   0xb   :  { %292 = vmatprep.subr.bf16.mxu0 %v1343_v21  ;;  %345 = vmatprep.subr.bf16.mxu1 %v1345_v24  ;;  %v1360_v40 = vcombine.low %v61_v28, %v61_v28  ;;  %v1341_v58 = vcombine.high %v39_v53, %v43_v54  ;;  %v51_v62 = vld [vmem:[%s2631_s1 + $0xb8] sm:$0xff]  ;;  %v1340_v0 = vcombine.low %v39_v53, %v43_v54  ;;  %v1386_v2 = vld [vmem:[%s2632_s0 + $0x8] sm:$0xff]   ;;  %v54_v5 = vld [vmem:[%s2631_s1 + $0xd0] sm:$0xff]  ;;  %v533_v26 = vlaneseq }
   0xc   :  { %v268_v39 = vand.u32 %v1359_v32, %v1480_v34  ;;  %v274_v41 = vand.u32 %v1361_v35, %v1480_v34  ;;  %v265_v46 = vand.u32 %v1358_v37, %v1480_v34  ;;  %v1347_v1 = vcombine.high %v46_v59, %v50_v60  ;;  %v58_v6 = vld [vmem:[%s2631_s1 + $0xf0] sm:$0xff]  ;;  %v55_v8 = vld [vmem:[%s2631_s1 + $0xd8] sm:$0xff]  ;;  %22 = vst.msk [vmem:[#allocation2] sm:$0xf] %vm2636_vm2, %v1394_v25 }
   0xd   :  { %v271_v47 = vand.u32 %v1360_v40, %v1480_v34  ;;  %v1349_v4 = vcombine.high %v47_v61, %v51_v62  ;;  %v62_v7 = vld [vmem:[%s2631_s1 + $0x110] sm:$0x11]  ;;  %v59_v9 = vld [vmem:[%s2631_s1 + $0xf8] sm:$0xff]  ;;  %v1346_v11 = vcombine.low %v46_v59, %v50_v60  ;;  %v1348_v12 = vcombine.low %v47_v61, %v51_v62  ;;  %23 = vst.msk [vmem:[#allocation3] sm:$0xf] %vm2636_vm2, %v1394_v25 }
   0xe   :  { %293 = vmatpush1.bf16.msra.mxu0 %v1342_v29  ;;  %346 = vmatpush1.bf16.msra.mxu1 %v1344_v30  ;;  %v63_v10 = vld [vmem:[%s2631_s1 + $0x118] sm:$0x11]  ;;  %v1355_v13 = vcombine.high %v54_v5, %v58_v6  ;;  %v1363_v14 = vcombine.high %v62_v7, %v62_v7  ;;  %v1357_v15 = vcombine.high %v55_v8, %v59_v9  ;;  %v1572_v27 = vand.u32 127, %v533_v26 }
   0xf   :  { %294 = vmatprep.subr.bf16.mxu0 %v1351_v31  ;;  %347 = vmatprep.subr.bf16.mxu1 %v1353_v33  ;;  %v1365_v16 = vcombine.high %v63_v10, %v63_v10  ;;  %v1354_v17 = vcombine.low %v54_v5, %v58_v6  ;;  %v1362_v18 = vcombine.low %v62_v7, %v62_v7 }
  0x10   :  { %v1356_v19 = vcombine.low %v55_v8, %v59_v9  ;;  %v280_v20 = vand.u32 %v1363_v14, %v1480_v34  ;;  %v1364_v21 = vcombine.low %v63_v10, %v63_v10  ;;  %2639 = vst [vmem:[#allocation4_spill] sm:$0xff] %v1572_v27  ;;  %v535_v28 = vadd.s32 128, %v1572_v27 }
  0x11   :  { %v286_v22 = vand.u32 %v1365_v16, %v1480_v34  ;;  %v277_v23 = vand.u32 %v1362_v18, %v1480_v34  ;;  %v559_v29 = vand.u32 7, %v1572_v27  ;;  %v551_v30 = vshra.s32 %v1572_v27, 3 }
  0x12   :  { %295 = vmatpush1.bf16.msra.mxu0 %v1350_v36  ;;  %348 = vmatpush1.bf16.msra.mxu1 %v1352_v38  ;;  %v283_v24 = vand.u32 %v1364_v21, %v1480_v34  ;;  %v552_v31 = vshra.s32 %v535_v28, 3  ;;  %v1579_v32 = vadd.s32 384, %v1572_v27  ;;  %v1582_v33 = vadd.s32 512, %v1572_v27 }
  0x13   :  { %296 = vmatprep.subr.bf16.mxu0 %v268_v39  ;;  %349 = vmatprep.subr.bf16.mxu1 %v274_v41  ;;  %v560_v34 = vand.u32 7, %v535_v28  ;;  %v1585_v35 = vadd.s32 640, %v1572_v27  ;;  %v1588_v36 = vadd.s32 768, %v1572_v27  ;;  %vm1590_vm4 = vcmp.lt.s32.totalorder %v559_v29, 7 }
  0x14   :  { %v1594_v38 = vand.u32 7, %v551_v30  ;;  %v1596_v41 = vand.u32 7, %v552_v31  ;;  %v554_v42 = vshra.s32 %v1579_v32, 3  ;;  %v1599_v43 = vshra.s32 %v551_v30, 3 }
  0x15   :  { %v1601_v44 = vshra.s32 %v552_v31, 3  ;;  %vm1609_vm5 = vcmp.lt.s32.totalorder %v560_v34, 7  ;;  %v556_v50 = vshra.s32 %v1585_v35, 3  ;;  %v557_v51 = vshra.s32 %v1588_v36, 3 }
  0x16   :  { %297 = vmatpush1.bf16.msra.mxu0 %v265_v46  ;;  %350 = vmatpush1.bf16.msra.mxu1 %v271_v47  ;;  %v555_v46 = vshra.s32 %v1582_v33, 3  ;;  %v1607_v47 = vadd.s32 896, %v1572_v27  ;;  %vm768_vm7 = vcmp.lt.s32.totalorder %v1594_v38, 7  ;;  %vm769_vm8 = vcmp.lt.s32.totalorder %v1596_v41, 7 }
  0x17   :  { %394 = vmatprep.subr.bf16.mxu0 %v1331_v48  ;;  %447 = vmatprep.subr.bf16.mxu1 %v1333_v49  ;;  %v1613_v49 = vshra.s32 %v554_v42, 3  ;;  %v583_v59 = vand.u32 7, %v1599_v43  ;;  %v584_v60 = vand.u32 7, %v1601_v44  ;;  %v1646_v6 = vand.u32 7, %v557_v51  ;;  %vm1685_vm11 = vmand %vm768_vm7, %vm1590_vm4 }
  0x18   :  { %v1619_v53 = vshra.s32 %v555_v46, 3  ;;  %v558_v62 = vshra.s32 %v1607_v47, 3  ;;  %vm1727_vm14 = vmand %vm769_vm8, %vm1609_vm5  ;;  %v2676_v38 = vand.u32 7, %v1588_v36 }
  0x19   :  { %1366 = vmatmul.mubr.msk.bf16.vlgmr.msra.gmra.mrb[0].mxu0 %vm254_vm1, %v1507_v52  ;;  %1368 = vmatmul.mubr.msk.bf16.vlgmr.msra.gmra.mrb[0].mxu1 %vm254_vm1, %v1507_v52  ;;  %vm1733_vm15 = vcmp.lt.s32.totalorder %v583_v59, 7  ;;  %vm1754_vm0 = vcmp.lt.s32.totalorder %v584_v60, 7 }
  0x1a   :  { %395 = vmatpush1.bf16.msra.mxu0 %v1330_v55  ;;  %448 = vmatpush1.bf16.msra.mxu1 %v1332_v56  ;;  %v1624_v55 = vand.u32 7, %v554_v42  ;;  %v1626_v56 = vshra.s32 %v556_v50, 3  ;;  %v1661_v18 = vand.u32 7, %v558_v62  ;;  %vm1868_vm2 = vmand %vm1733_vm15, %vm768_vm7 }
  0x1b   :  { %396 = vmatprep.subr.bf16.mxu0 %v1339_v57  ;;  %449 = vmatprep.subr.bf16.mxu1 %v1341_v58  ;;  %v1628_v57 = vshra.s32 %v557_v51, 3 }
  0x1c   :  { %330 = vmatprep.mubr.bf16.mxu0 %v1393_v3  ;;  %383 = vmatprep.mubr.bf16.mxu1 %v1393_v3  ;;  %vm2637_vm13 = vcmp.lt.s32.totalorder %v1624_v55, 7  ;;  %v2682_v58 = vand.u32 7, %v1626_v56 }
  0x1e   :  { %397 = vmatpush1.bf16.msra.mxu0 %v1338_v63  ;;  %450 = vmatpush1.bf16.msra.mxu1 %v1340_v0  ;;  %v586_v63 = vand.u32 7, %v1613_v49  ;;  %v563_v0 = vand.u32 7, %v1582_v33 }
  0x1f   :  { %398 = vmatprep.subr.bf16.mxu0 %v1347_v1  ;;  %451 = vmatprep.subr.bf16.mxu1 %v1349_v4  ;;  %v1643_v4 = vand.u32 7, %v556_v50 }
  0x21   :  { %1367 = vmatmul.mubr.msk.bf16.gmra.mrb[4].mxu0 %vm254_vm1, %v1386_v2  ;;  %1369 = vmatmul.mubr.msk.bf16.gmra.mrb[4].mxu1 %vm254_vm1, %v1386_v2 }
  0x22   :  { %399 = vmatpush1.bf16.msra.mxu0 %v1346_v11  ;;  %452 = vmatpush1.bf16.msra.mxu1 %v1348_v12  ;;  %v1653_v12 = vshra.s32 %v558_v62, 3 }
  0x23   :  { %400 = vmatprep.subr.bf16.mxu0 %v1355_v13  ;;  %453 = vmatprep.subr.bf16.mxu1 %v1357_v15 }
  0x24   :  { %426 = vmatprep.mubr.bf16.mxu0 %v1393_v3  ;;  %479 = vmatprep.mubr.bf16.mxu1 %v1393_v3 }
  0x26   :  { %401 = vmatpush1.bf16.msra.mxu0 %v1354_v17  ;;  %454 = vmatpush1.bf16.msra.mxu1 %v1356_v19 }
  0x27   :  { %402 = vmatprep.subr.bf16.mxu0 %v280_v20  ;;  %455 = vmatprep.subr.bf16.mxu1 %v286_v22 }
  0x2a   :  { %403 = vmatpush1.bf16.msra.mxu0 %v277_v23  ;;  %456 = vmatpush1.bf16.msra.mxu1 %v283_v24 }
  0x2d   :  { %1370 = vmatmul.mubr.msk.bf16.vlgmr.msra.gmra.mrb[8].mxu0 %vm254_vm1, %v1507_v52  ;;  %1372 = vmatmul.mubr.msk.bf16.vlgmr.msra.gmra.mrb[8].mxu1 %vm254_vm1, %v1507_v52  ;;  %v562_v52 = vand.u32 7, %v1579_v32 }
  0x2e   :  { %436 = vmatprep.mubr.bf16.mxu0 %v1393_v3  ;;  %489 = vmatprep.mubr.bf16.mxu1 %v1393_v3  ;;  %v536_v3 = vadd.s32 256, %v1572_v27 }
  0x2f   :  { %vm1693_vm12 = vcmp.lt.s32.totalorder %v562_v52, 7 }
  0x30   :  { %v553_v39 = vshra.s32 %v536_v3, 3  ;;  %v561_v40 = vand.u32 7, %v536_v3 }
  0x32   :  { %v1603_v45 = vshra.s32 %v553_v39, 3  ;;  %v1622_v54 = vand.u32 7, %v553_v39  ;;  %vm1630_vm9 = vcmp.lt.s32.totalorder %v561_v40, 7 }
  0x34   :  { %v585_v61 = vand.u32 7, %v1603_v45  ;;  %vm770_vm10 = vcmp.lt.s32.totalorder %v1622_v54, 7 }
  0x35   :  { %1371 = vmatmul.mubr.msk.bf16.gmra.mrb[12].mxu0 %vm254_vm1, %v1386_v2  ;;  %1373 = vmatmul.mubr.msk.bf16.gmra.mrb[12].mxu1 %vm254_vm1, %v1386_v2  ;;  %v1641_v2 = vand.u32 7, %v555_v46  ;;  %vm1781_vm1 = vmand %vm770_vm10, %vm1630_vm9 }
  0xec   :  { %v322_v8 = vpop.f32.mrb[0].mxu0  ;;  %v375_v17 = vpop.f32.mrb[0].mxu1 }
  0xed   :  { %500 = vst [vmem:[%s2633_s3] sm:$0xff] %v322_v8  ;;  %v625_v13 = vsel %vm624_vm3, %v322_v8, 0.0  ;;  %v646_v14 = vmul.f32 %v322_v8, %v322_v8  ;;  %v705_v15 = vsel %vm1590_vm4, %v322_v8, 0.0  ;;  %v324_v16 = vpop.f32.mrb[1].mxu0  ;;  %502 = vst [vmem:[%s2633_s3 + $0x10] sm:$0xff] %v375_v17  ;;  %v1671_v24 = vpop.f32.mrb[1].mxu1 }
  0xee   :  { %v715_v19 = vsel %vm714_vm6, %v705_v15, 0.0  ;;  %v738_v20 = vmul.f32 %v705_v15, %v705_v15  ;;  %501 = vst [vmem:[%s2633_s3 + $0x8] sm:$0xff] %v324_v16  ;;  %v626_v21 = vsel %vm624_vm3, %v324_v16, 0.0  ;;  %v647_v22 = vmul.f32 %v324_v16, %v324_v16  ;;  %v326_v23 = vpop.f32.mrb[2].mxu0  ;;  %503 = vst [vmem:[%s2633_s3 + $0x18] sm:$0xff] %v1671_v24  ;;  %v1697_v32 = vpop.f32.mrb[2].mxu1 }
  0xef   :  { %v654_v25 = vsel %vm624_vm3, %v646_v14, 0.0  ;;  %v627_v26 = vadd.f32 %v626_v21, %v625_v13  ;;  %v706_v28 = vsel %vm1609_vm5, %v324_v16, 0.0  ;;  %508 = vst [vmem:[%s2633_s3 + $0x40] sm:$0xff] %v326_v23  ;;  %v800_v29 = vsel %vm768_vm7, %v326_v23, 0.0  ;;  %v328_v3 = vpop.f32.mrb[3].mxu0  ;;  %510 = vst [vmem:[%s2633_s3 + $0x50] sm:$0xff] %v1697_v32 }
  0xf0   :  { %v746_v34 = vsel %vm714_vm6, %v738_v20, 0.0  ;;  %v655_v39 = vsel %vm624_vm3, %v647_v22, 0.0  ;;  %v716_v40 = vsel %vm714_vm6, %v706_v28, 0.0  ;;  %v739_v42 = vmul.f32 %v706_v28, %v706_v28  ;;  %509 = vst [vmem:[%s2633_s3 + $0x48] sm:$0xff] %v328_v3  ;;  %v1709_v46 = vpop.f32.mrb[3].mxu1  ;;  %vm1196_vm7 = vmand %vm1868_vm2, %vm1590_vm4 }
  0xf1   :  { %v656_v50 = vadd.f32 %v655_v39, %v654_v25  ;;  %v717_v51 = vadd.f32 %v716_v40, %v715_v19  ;;  %v809_v52 = vsel %vm624_vm3, %v800_v29, 0.0  ;;  %v829_v62 = vmul.f32 %v800_v29, %v800_v29  ;;  %511 = vst [vmem:[%s2633_s3 + $0x58] sm:$0xff] %v1709_v46 }
  0xf2   :  { %v747_v8 = vsel %vm714_vm6, %v739_v42, 0.0  ;;  %v880_v13 = vsel %vm1685_vm11, %v326_v23, 0.0  ;;  %v628_v14 = vsel %vm624_vm3, %v375_v17, 0.0  ;;  %v648_v15 = vmul.f32 %v375_v17, %v375_v17  ;;  %vm859_vm11 = vmand %vm2637_vm13, %vm1693_vm12 }
  0xf3   :  { %v748_v16 = vadd.f32 %v747_v8, %v746_v34  ;;  %v837_v19 = vsel %vm624_vm3, %v829_v62, 0.0  ;;  %v889_v20 = vsel %vm714_vm6, %v880_v13, 0.0  ;;  %v912_v21 = vmul.f32 %v880_v13, %v880_v13 }
  0xf4   :  { %v629_v25 = vadd.f32 %v628_v14, %v627_v26  ;;  %v657_v28 = vsel %vm624_vm3, %v648_v15, 0.0  ;;  %v707_v29 = vsel %vm1630_vm9, %v375_v17, 0.0  ;;  %v801_v30 = vsel %vm769_vm8, %v328_v3, 0.0  ;;  %v1742_v34 = vpop.f32.mrb[4].mxu0  ;;  %v1758_v42 = vpop.f32.mrb[4].mxu1 }
  0xf5   :  { %v920_v39 = vsel %vm714_vm6, %v912_v21, 0.0  ;;  %v658_v40 = vadd.f32 %v657_v28, %v656_v50  ;;  %v718_v43 = vsel %vm714_vm6, %v707_v29, 0.0  ;;  %v740_v59 = vmul.f32 %v707_v29, %v707_v29  ;;  %516 = vst [vmem:[%s2633_s3 + $0x80] sm:$0xff] %v1742_v34  ;;  %v1750_v26 = vpop.f32.mrb[5].mxu0  ;;  %518 = vst [vmem:[%s2633_s3 + $0x90] sm:$0xff] %v1758_v42  ;;  %v1773_v44 = vpop.f32.mrb[5].mxu1 }
  0xf6   :  { %v719_v62 = vadd.f32 %v718_v43, %v717_v51  ;;  %v810_v50 = vsel %vm624_vm3, %v801_v30, 0.0  ;;  %v830_v8 = vmul.f32 %v801_v30, %v801_v30  ;;  %v881_v13 = vsel %vm1727_vm14, %v328_v3, 0.0  ;;  %517 = vst [vmem:[%s2633_s3 + $0x88] sm:$0xff] %v1750_v26  ;;  %v1767_v14 = vpop.f32.mrb[6].mxu0  ;;  %519 = vst [vmem:[%s2633_s3 + $0x98] sm:$0xff] %v1773_v44 }
  0xf7   :  { %v749_v60 = vsel %vm714_vm6, %v740_v59, 0.0  ;;  %v811_v51 = vadd.f32 %v810_v50, %v809_v52  ;;  %v890_v15 = vsel %vm714_vm6, %v881_v13, 0.0  ;;  %v913_v3 = vmul.f32 %v881_v13, %v881_v13  ;;  %524 = vst [vmem:[%s2633_s3 + $0xc0] sm:$0xff] %v1767_v14  ;;  %v1789_v22 = vpop.f32.mrb[7].mxu0  ;;  %v1795_v52 = vpop.f32.mrb[6].mxu1  ;;  %vm1030_vm14 = vmand %vm1733_vm15, %vm1590_vm4 }
  0xf8   :  { %v1797_v28 = vadd.f32 %v749_v60, %v748_v16  ;;  %v838_v29 = vsel %vm624_vm3, %v830_v8, 0.0  ;;  %v891_v30 = vadd.f32 %v890_v15, %v889_v20  ;;  %v630_v43 = vsel %vm624_vm3, %v1671_v24, 0.0  ;;  %525 = vst [vmem:[%s2633_s3 + $0xc8] sm:$0xff] %v1789_v22  ;;  %526 = vst [vmem:[%s2633_s3 + $0xd0] sm:$0xff] %v1795_v52  ;;  %v1810_v59 = vpop.f32.mrb[7].mxu1 }
  0xf9   :  { %v839_v16 = vadd.f32 %v838_v29, %v837_v19  ;;  %v921_v50 = vsel %vm714_vm6, %v913_v3, 0.0  ;;  %v1813_v8 = vadd.f32 %v630_v43, %v629_v25  ;;  %v649_v20 = vmul.f32 %v1671_v24, %v1671_v24  ;;  %527 = vst [vmem:[%s2633_s3 + $0xd8] sm:$0xff] %v1810_v59 }
  0xfa   :  { %v922_v13 = vadd.f32 %v921_v50, %v920_v39  ;;  %v708_v60 = vsel %vm1693_vm12, %v1671_v24, 0.0  ;;  %v802_v19 = vsel %vm770_vm10, %v1697_v32, 0.0  ;;  %v882_v25 = vsel %vm1781_vm1, %v1697_v32, 0.0 }
  0xfb   :  { %v659_v15 = vsel %vm624_vm3, %v649_v20, 0.0  ;;  %v720_v3 = vsel %vm714_vm6, %v708_v60, 0.0  ;;  %v812_v29 = vsel %vm624_vm3, %v802_v19, 0.0  ;;  %v831_v11 = vmul.f32 %v802_v19, %v802_v19 }
  0xfc   :  { %v1834_v43 = vadd.f32 %v659_v15, %v658_v40  ;;  %v1836_v50 = vadd.f32 %v720_v3, %v719_v62  ;;  %v813_v24 = vadd.f32 %v812_v29, %v811_v51  ;;  %v1842_v32 = vmul.f32 %v708_v60, %v708_v60 }
  0xfd   :  { %v892_v21 = vsel %vm714_vm6, %v882_v25, 0.0  ;;  %v914_v20 = vmul.f32 %v882_v25, %v882_v25  ;;  %v803_v39 = vsel %vm2637_vm13, %v1709_v46, 0.0  ;;  %v840_v40 = vsel %vm624_vm3, %v831_v11, 0.0  ;;  %vm1031_vm13 = vmand %vm1754_vm0, %vm1609_vm5 }
  0xfe   :  { %v893_v62 = vadd.f32 %v892_v21, %v891_v30  ;;  %v814_v51 = vsel %vm624_vm3, %v803_v39, 0.0  ;;  %v832_v19 = vmul.f32 %v803_v39, %v803_v39  ;;  %vm1856_vm1 = vcmp.lt.s32.totalorder %v585_v61, 7 }
  0xff   :  { %v841_v25 = vadd.f32 %v840_v40, %v839_v16  ;;  %v923_v15 = vsel %vm714_vm6, %v914_v20, 0.0  ;;  %v1861_v3 = vadd.f32 %v814_v51, %v813_v24  ;;  %v883_v11 = vsel %vm859_vm11, %v1709_v46, 0.0  ;;  %vm2023_vm4 = vmand %vm1856_vm1, %vm770_vm10 }
 0x100   :  { %v924_v45 = vadd.f32 %v923_v15, %v922_v13  ;;  %v842_v61 = vsel %vm624_vm3, %v832_v19, 0.0  ;;  %v894_v29 = vsel %vm714_vm6, %v883_v11, 0.0  ;;  %v915_v16 = vmul.f32 %v883_v11, %v883_v11  ;;  %v1884_v46 = vpop.f32.mrb[8].mxu0  ;;  %v1905_v21 = vpop.f32.mrb[8].mxu1 }
 0x101   :  { %vm1880_vm11 = vcmp.lt.s32.totalorder %v586_v63, 7  ;;  %v1886_v39 = vadd.f32 %v842_v61, %v841_v25  ;;  %v1888_v13 = vadd.f32 %v894_v29, %v893_v62  ;;  %v974_v24 = vsel %vm1733_vm15, %v1742_v34, 0.0  ;;  %504 = vst [vmem:[%s2633_s3 + $0x20] sm:$0xff] %v1884_v46  ;;  %v1903_v63 = vpop.f32.mrb[9].mxu0  ;;  %506 = vst [vmem:[%s2633_s3 + $0x30] sm:$0xff] %v1905_v21  ;;  %v1924_v51 = vpop.f32.mrb[9].mxu1 }
 0x102   :  { %v1054_v49 = vsel %vm1030_vm14, %v1742_v34, 0.0  ;;  %v925_v20 = vsel %vm714_vm6, %v915_v16, 0.0  ;;  %v983_v40 = vsel %vm624_vm3, %v974_v24, 0.0  ;;  %v1003_v62 = vmul.f32 %v974_v24, %v974_v24  ;;  %505 = vst [vmem:[%s2633_s3 + $0x28] sm:$0xff] %v1903_v63  ;;  %v1922_v34 = vpop.f32.mrb[10].mxu0  ;;  %vm1941_vm15 = vmand %vm1754_vm0, %vm769_vm8 }
 0x103   :  { %v1063_v23 = vsel %vm714_vm6, %v1054_v49, 0.0  ;;  %v1926_v19 = vadd.f32 %v925_v20, %v924_v45  ;;  %v1086_v25 = vmul.f32 %v1054_v49, %v1054_v49  ;;  %v975_v15 = vsel %vm1754_vm0, %v1750_v26, 0.0  ;;  %512 = vst [vmem:[%s2633_s3 + $0x60] sm:$0xff] %v1922_v34  ;;  %507 = vst [vmem:[%s2633_s3 + $0x38] sm:$0xff] %v1924_v51  ;;  %v1953_v45 = vpop.f32.mrb[11].mxu0 }
 0x104   :  { %v1055_v11 = vsel %vm1031_vm13, %v1750_v26, 0.0  ;;  %v1955_v26 = vpop.f32.mrb[10].mxu1  ;;  %v1011_v41 = vsel %vm624_vm3, %v1003_v62, 0.0  ;;  %v984_v17 = vsel %vm624_vm3, %v975_v15, 0.0  ;;  %v1004_v29 = vmul.f32 %v975_v15, %v975_v15  ;;  %513 = vst [vmem:[%s2633_s3 + $0x68] sm:$0xff] %v1953_v45  ;;  %vm1197_vm8 = vmand %vm1941_vm15, %vm1609_vm5 }
 0x105   :  { %v1064_v16 = vsel %vm714_vm6, %v1055_v11, 0.0  ;;  %514 = vst [vmem:[%s2633_s3 + $0x70] sm:$0xff] %v1955_v26  ;;  %v1968_v24 = vpop.f32.mrb[11].mxu1  ;;  %v1094_v49 = vsel %vm714_vm6, %v1086_v25, 0.0  ;;  %v985_v20 = vadd.f32 %v984_v17, %v983_v40  ;;  %v1087_v10 = vmul.f32 %v1055_v11, %v1055_v11  ;;  %vm1033_vm5 = vmand %vm1880_vm11, %vm1693_vm12 }
 0x106   :  { %v1065_v62 = vadd.f32 %v1064_v16, %v1063_v23  ;;  %515 = vst [vmem:[%s2633_s3 + $0x78] sm:$0xff] %v1968_v24  ;;  %v1012_v15 = vsel %vm624_vm3, %v1004_v29, 0.0  ;;  %v1140_v9 = vsel %vm1868_vm2, %v1767_v14, 0.0  ;;  %v1220_v40 = vsel %vm1196_vm7, %v1767_v14, 0.0  ;;  %vm1032_vm2 = vmand %vm1856_vm1, %vm1630_vm9 }
 0x107   :  { %v1141_v23 = vsel %vm1941_vm15, %v1789_v22, 0.0  ;;  %v1013_v25 = vadd.f32 %v1012_v15, %v1011_v41  ;;  %v1095_v11 = vsel %vm714_vm6, %v1087_v10, 0.0  ;;  %v1149_v17 = vsel %vm624_vm3, %v1140_v9, 0.0  ;;  %vm1198_vm0 = vmand %vm2023_vm4, %vm1630_vm9 }
 0x108   :  { %v1169_v29 = vmul.f32 %v1140_v9, %v1140_v9  ;;  %v1096_v30 = vadd.f32 %v1095_v11, %v1094_v49  ;;  %v1229_v37 = vsel %vm714_vm6, %v1220_v40, 0.0  ;;  %v1252_v16 = vmul.f32 %v1220_v40, %v1220_v40  ;;  %v1996_v7 = vpop.f32.mrb[12].mxu0  ;;  %v2012_v10 = vpop.f32.mrb[12].mxu1 }
 0x109   :  { %v1150_v14 = vsel %vm624_vm3, %v1141_v23, 0.0  ;;  %v1170_v61 = vmul.f32 %v1141_v23, %v1141_v23  ;;  %v1221_v41 = vsel %vm1197_vm8, %v1789_v22, 0.0  ;;  %520 = vst [vmem:[%s2633_s3 + $0xa0] sm:$0xff] %v1996_v7  ;;  %v2010_v9 = vpop.f32.mrb[13].mxu0  ;;  %v976_v22 = vsel %vm1856_vm1, %v1758_v42, 0.0  ;;  %522 = vst [vmem:[%s2633_s3 + $0xb0] sm:$0xff] %v2012_v10 }
 0x10a   :  { %v1177_v5 = vsel %vm624_vm3, %v1169_v29, 0.0  ;;  %v1999_v48 = vadd.f32 %v1150_v14, %v1149_v17  ;;  %v1260_v49 = vsel %vm714_vm6, %v1252_v16, 0.0  ;;  %v1230_v15 = vsel %vm714_vm6, %v1221_v41, 0.0  ;;  %521 = vst [vmem:[%s2633_s3 + $0xa8] sm:$0xff] %v2010_v9  ;;  %v2031_v11 = vpop.f32.mrb[14].mxu0  ;;  %v2037_v17 = vpop.f32.mrb[13].mxu1 }
 0x10b   :  { %v1253_v40 = vmul.f32 %v1221_v41, %v1221_v41  ;;  %v1178_v54 = vsel %vm624_vm3, %v1170_v61, 0.0  ;;  %v1231_v29 = vadd.f32 %v1230_v15, %v1229_v37  ;;  %v986_v16 = vsel %vm624_vm3, %v976_v22, 0.0  ;;  %528 = vst [vmem:[%s2633_s3 + $0xe0] sm:$0xff] %v2031_v11  ;;  %v2049_v41 = vpop.f32.mrb[15].mxu0  ;;  %523 = vst [vmem:[%s2633_s3 + $0xb8] sm:$0xff] %v2037_v17  ;;  %v2055_v37 = vpop.f32.mrb[14].mxu1 }
 0x10c   :  { %v1005_v14 = vmul.f32 %v976_v22, %v976_v22  ;;  %v1179_v61 = vadd.f32 %v1178_v54, %v1177_v5  ;;  %v987_v22 = vadd.f32 %v986_v16, %v985_v20  ;;  %v1056_v1 = vsel %vm1032_vm2, %v1758_v42, 0.0  ;;  %529 = vst [vmem:[%s2633_s3 + $0xe8] sm:$0xff] %v2049_v41  ;;  %530 = vst [vmem:[%s2633_s3 + $0xf0] sm:$0xff] %v2055_v37  ;;  %v2079_v5 = vpop.f32.mrb[15].mxu1 }
 0x10d   :  { %v1261_v15 = vsel %vm714_vm6, %v1253_v40, 0.0  ;;  %vm2066_vm10 = vcmp.lt.s32.totalorder %v563_v0, 7  ;;  %vm772_vm13 = vcmp.lt.s32.totalorder %v1641_v2, 7  ;;  %v1066_v0 = vsel %vm714_vm6, %v1056_v1, 0.0  ;;  %531 = vst [vmem:[%s2633_s3 + $0xf8] sm:$0xff] %v2079_v5 }
 0x10e   :  { %v1262_v42 = vadd.f32 %v1261_v15, %v1260_v49  ;;  %v1014_v33 = vsel %vm624_vm3, %v1005_v14, 0.0  ;;  %v1088_v60 = vmul.f32 %v1056_v1, %v1056_v1  ;;  %v2670_v20 = vand.u32 7, %v1585_v35 }
 0x10f   :  { %v1015_v49 = vadd.f32 %v1014_v33, %v1013_v25  ;;  %v1067_v54 = vadd.f32 %v1066_v0, %v1065_v62  ;;  %v977_v1 = vsel %vm1880_vm11, %v1773_v44, 0.0  ;;  %v1057_v35 = vsel %vm1033_vm5, %v1773_v44, 0.0 }
 0x110   :  { %vm2089_vm14 = vcmp.lt.s32.totalorder %v2670_v20, 7  ;;  %vm2673_vm1 = vcmp.lt.s32.totalorder %v1624_v55, 7  ;;  %vm773_vm15 = vcmp.lt.s32.totalorder %v1643_v4, 7  ;;  %v1097_v62 = vsel %vm714_vm6, %v1088_v60, 0.0 }
 0x111   :  { %vm2110_vm7 = vmand %vm1880_vm11, %vm2673_vm1  ;;  %v988_v25 = vsel %vm624_vm3, %v977_v1, 0.0  ;;  %v1006_v14 = vmul.f32 %v977_v1, %v977_v1  ;;  %v1068_v15 = vsel %vm714_vm6, %v1057_v35, 0.0  ;;  %v1098_v33 = vadd.f32 %v1097_v62, %v1096_v30 }
 0x112   :  { %v2118_v0 = vadd.f32 %v988_v25, %v987_v22  ;;  %v2120_v44 = vadd.f32 %v1068_v15, %v1067_v54  ;;  %v1089_v55 = vmul.f32 %v1057_v35, %v1057_v35  ;;  %vm2124_vm11 = vcmp.lt.s32.totalorder %v2676_v38, 7  ;;  %vm1199_vm9 = vmand %vm2110_vm7, %vm1693_vm12 }
 0x113   :  { %vm774_vm8 = vcmp.lt.s32.totalorder %v1646_v6, 7  ;;  %v1016_v60 = vsel %vm624_vm3, %v1006_v14, 0.0  ;;  %v1142_v1 = vsel %vm2023_vm4, %v1795_v52, 0.0  ;;  %v1222_v30 = vsel %vm1198_vm0, %v1795_v52, 0.0  ;;  %vm860_vm12 = vmand %vm772_vm13, %vm2066_vm10 }
 0x114   :  { %v1143_v36 = vsel %vm2110_vm7, %v1810_v59, 0.0  ;;  %v2679_v22 = vand.u32 7, %v1619_v53  ;;  %v2148_v35 = vadd.f32 %v1016_v60, %v1015_v49  ;;  %v1099_v62 = vsel %vm714_vm6, %v1089_v55, 0.0  ;;  %vm861_vm5 = vmand %vm773_vm15, %vm2089_vm14 }
 0x115   :  { %v1152_v23 = vsel %vm624_vm3, %v1142_v1, 0.0  ;;  %v1171_v25 = vmul.f32 %v1142_v1, %v1142_v1  ;;  %vm2158_vm4 = vcmp.lt.s32.totalorder %v2682_v58, 7  ;;  %v2162_v52 = vadd.f32 %v1099_v62, %v1098_v33  ;;  %vm2231_vm0 = vmand %vm774_vm8, %vm2124_vm11 }
 0x116   :  { %vm2144_vm2 = vcmp.lt.s32.totalorder %v2679_v22, 7  ;;  %v1153_v49 = vadd.f32 %v1152_v23, %v1999_v48  ;;  %v1232_v14 = vsel %vm714_vm6, %v1222_v30, 0.0  ;;  %v1254_v15 = vmul.f32 %v1222_v30, %v1222_v30 }
 0x117   :  { %2685 = vst [vmem:[#allocation5_spill] sm:$0xff] %v2162_v52  ;;  %v1180_v55 = vsel %vm624_vm3, %v1171_v25, 0.0  ;;  %v1233_v38 = vadd.f32 %v1232_v14, %v1231_v29  ;;  %v1154_v31 = vsel %vm624_vm3, %v1143_v36, 0.0  ;;  %v1172_v16 = vmul.f32 %v1143_v36, %v1143_v36  ;;  %vm1034_vm1 = vmand %vm2144_vm2, %vm2066_vm10 }
 0x118   :  { %v1181_v60 = vadd.f32 %v1180_v55, %v1179_v61  ;;  %v1263_v56 = vsel %vm714_vm6, %v1254_v15, 0.0  ;;  %v2169_v1 = vadd.f32 %v1154_v31, %v1153_v49  ;;  %v1223_v22 = vsel %vm1199_vm9, %v1810_v59, 0.0 }
 0x119   :  { %v1264_v33 = vadd.f32 %v1263_v56, %v1262_v42  ;;  %v1182_v62 = vsel %vm624_vm3, %v1172_v16, 0.0  ;;  %v1234_v48 = vsel %vm714_vm6, %v1223_v22, 0.0  ;;  %v1255_v23 = vmul.f32 %v1223_v22, %v1223_v22 }
 0x11a   :  { %v2176_v30 = vsel %vm714_vm6, %v1842_v32, 0.0  ;;  %v2178_v29 = vadd.f32 %v1182_v62, %v1181_v60  ;;  %v2180_v36 = vadd.f32 %v1234_v48, %v1233_v38  ;;  %v650_v61 = vmul.f32 %v1884_v46, %v1884_v46 }
 0x11b   :  { %v1265_v59 = vsel %vm714_vm6, %v1255_v23, 0.0  ;;  %v632_v42 = vsel %vm624_vm3, %v1884_v46, 0.0  ;;  %v709_v32 = vsel %vm2066_vm10, %v1884_v46, 0.0  ;;  %v2197_v25 = vsel %vm2089_vm14, %v1903_v63, 0.0 }
 0x11c   :  { %2686 = vst [vmem:[#allocation6_spill] sm:$0xff] %v2178_v29  ;;  %v2199_v58 = vadd.f32 %v1265_v59, %v1264_v33  ;;  %v2202_v49 = vsel %vm624_vm3, %v650_v61, 0.0  ;;  %v2205_v14 = vsel %vm714_vm6, %v709_v32, 0.0  ;;  %v2209_v15 = vmul.f32 %v1903_v63, %v1903_v63 }
 0x11d   :  { %v2215_v46 = vmul.f32 %v709_v32, %v709_v32  ;;  %v2219_v55 = vmul.f32 %v2197_v25, %v2197_v25  ;;  %v804_v38 = vsel %vm772_vm13, %v1922_v34, 0.0  ;;  %v884_v31 = vsel %vm860_vm12, %v1922_v34, 0.0  ;;  %vm1035_vm12 = vmand %vm2158_vm4, %vm2089_vm14 }
 0x11e   :  { %2687 = vst [vmem:[#allocation7_spill] sm:$0xff] %v2199_v58  ;;  %v816_v16 = vsel %vm624_vm3, %v804_v38, 0.0  ;;  %v833_v60 = vmul.f32 %v804_v38, %v804_v38  ;;  %v896_v56 = vsel %vm714_vm6, %v884_v31, 0.0  ;;  %v916_v22 = vmul.f32 %v884_v31, %v884_v31 }
 0x11f   :  { %v2236_v62 = vadd.f32 %v816_v16, %v1861_v3  ;;  %v2239_v48 = vadd.f32 %v896_v56, %v1888_v13  ;;  %v805_v34 = vsel %vm773_vm15, %v1953_v45, 0.0  ;;  %v885_v23 = vsel %vm861_vm5, %v1953_v45, 0.0  ;;  %vm2294_vm5 = vmand %vm2144_vm2, %vm772_vm13 }
 0x120   :  { %v2690_v61 = vand.u32 7, %v1607_v47  ;;  %v2693_v3 = vand.u32 7, %v1628_v57  ;;  %v2263_v45 = vmul.f32 %v1905_v21, %v1905_v21  ;;  %v2266_v32 = vsel %vm624_vm3, %v833_v60, 0.0  ;;  %vm1200_vm13 = vmand %vm2294_vm5, %vm2066_vm10 }
 0x121   :  { %v2269_v38 = vsel %vm714_vm6, %v916_v22, 0.0  ;;  %v2272_v47 = vsel %vm624_vm3, %v805_v34, 0.0  ;;  %v2278_v57 = vmul.f32 %v805_v34, %v805_v34  ;;  %v2281_v31 = vsel %vm714_vm6, %v885_v23, 0.0  ;;  %vm2368_vm10 = vmand %vm2158_vm4, %vm773_vm15 }
 0x122   :  { %vm2251_vm7 = vcmp.lt.s32.totalorder %v2690_v61, 7  ;;  %vm2257_vm9 = vcmp.lt.s32.totalorder %v2693_v3, 7  ;;  %v2283_v16 = vmul.f32 %v885_v23, %v885_v23  ;;  %v2288_v60 = vsel %vm774_vm8, %v1955_v26, 0.0  ;;  %vm1201_vm15 = vmand %vm2368_vm10, %vm2089_vm14 }
 0x123   :  { %v2300_v22 = vmul.f32 %v2288_v60, %v2288_v60  ;;  %v2305_v34 = vsel %vm2231_vm0, %v1955_v26, 0.0  ;;  %v978_v23 = vsel %vm2144_vm2, %v1996_v7, 0.0  ;;  %v1058_v2 = vsel %vm1034_vm1, %v1996_v7, 0.0  ;;  %vm2416_vm1 = vmand %vm2257_vm9, %vm774_vm8 }
 0x124   :  { %v990_v61 = vsel %vm624_vm3, %v978_v23, 0.0  ;;  %v1007_v3 = vmul.f32 %v978_v23, %v978_v23  ;;  %v1070_v58 = vsel %vm714_vm6, %v1058_v2, 0.0  ;;  %v1090_v29 = vmul.f32 %v1058_v2, %v1058_v2  ;;  %vm1202_vm14 = vmand %vm2416_vm1, %vm2124_vm11 }
 0x125   :  { %v2319_v26 = vadd.f32 %v990_v61, %v2118_v0  ;;  %v2322_v33 = vadd.f32 %v1070_v58, %v2120_v44  ;;  %v979_v54 = vsel %vm2158_vm4, %v2010_v9, 0.0  ;;  %v1059_v7 = vsel %vm1035_vm12, %v2010_v9, 0.0  ;;  %vm1036_vm4 = vmand %vm2257_vm9, %vm2124_vm11 }
 0x126   :  { %v2339_v0 = vmul.f32 %v2305_v34, %v2305_v34  ;;  %v2342_v44 = vsel %vm624_vm3, %v1007_v3, 0.0  ;;  %v2345_v58 = vsel %vm714_vm6, %v1090_v29, 0.0  ;;  %v2348_v23 = vsel %vm624_vm3, %v979_v54, 0.0 }
 0x127   :  { %2698 = vst [vmem:[#allocation8_spill] sm:$0xff] %v2345_v58  ;;  %v2699_v9 = vand.u32 7, %v1653_v12  ;;  %v2356_v2 = vmul.f32 %v979_v54, %v979_v54  ;;  %v2359_v61 = vsel %vm714_vm6, %v1059_v7, 0.0  ;;  %v633_v3 = vadd.f32 %v632_v42, %v1813_v8 }
 0x128   :  { %v634_v29 = vsel %vm624_vm3, %v1903_v63, 0.0  ;;  %v636_v54 = vsel %vm624_vm3, %v1905_v21, 0.0  ;;  %v1144_v8 = vsel %vm2294_vm5, %v2031_v11, 0.0  ;;  %v1224_v42 = vsel %vm1200_vm13, %v2031_v11, 0.0 }
 0x129   :  { %vm2352_vm2 = vcmp.lt.s32.totalorder %v2699_v9, 7  ;;  %v2372_v9 = vmul.f32 %v1059_v7, %v1059_v7  ;;  %vm775_vm0 = vcmp.lt.s32.totalorder %v1661_v18, 7  ;;  %v635_v4 = vadd.f32 %v634_v29, %v633_v3 }
 0x12a   :  { %v1156_v63 = vsel %vm624_vm3, %v1144_v8, 0.0  ;;  %v1173_v53 = vmul.f32 %v1144_v8, %v1144_v8  ;;  %v1236_v58 = vsel %vm714_vm6, %v1224_v42, 0.0  ;;  %v1256_v52 = vmul.f32 %v1224_v42, %v1224_v42  ;;  %vm1037_vm12 = vmand %vm2352_vm2, %vm2251_vm7 }
 0x12b   :  { %2704 = vst [vmem:[#allocation9_spill] sm:$0xff] %v2372_v9  ;;  %v1157_v7 = vadd.f32 %v1156_v63, %v2169_v1  ;;  %v1237_v9 = vadd.f32 %v1236_v58, %v2180_v36  ;;  %v711_v56 = vsel %vm2124_vm11, %v1905_v21, 0.0  ;;  %v637_v11 = vadd.f32 %v636_v54, %v635_v4  ;;  %vm2464_vm11 = vmand %vm2352_vm2, %vm775_vm0 }
 0x12c   :  { %v638_v3 = vsel %vm624_vm3, %v1924_v51, 0.0  ;;  %v712_v1 = vsel %vm2251_vm7, %v1924_v51, 0.0  ;;  %v723_v36 = vadd.f32 %v2205_v14, %v1836_v50  ;;  %v2404_v21 = vsel %vm624_vm3, %v1173_v53, 0.0  ;;  %vm1203_vm8 = vmand %vm2464_vm11, %vm2251_vm7 }
 0x12d   :  { %v2407_v58 = vsel %vm714_vm6, %v1256_v52, 0.0  ;;  %v724_v29 = vsel %vm714_vm6, %v2197_v25, 0.0  ;;  %v726_v54 = vsel %vm714_vm6, %v711_v56, 0.0  ;;  %v639_v14 = vadd.f32 %v638_v3, %v637_v11 }
 0x12e   :  { %v725_v8 = vadd.f32 %v724_v29, %v723_v36  ;;  %v728_v42 = vsel %vm714_vm6, %v712_v1, 0.0  ;;  %v744_v4 = vmul.f32 %v711_v56, %v711_v56  ;;  %v1145_v52 = vsel %vm2368_vm10, %v2049_v41, 0.0 }
 0x12f   :  { %v1225_v6 = vsel %vm1201_vm15, %v2049_v41, 0.0  ;;  %v2433_v25 = vsel %vm2257_vm9, %v2012_v10, 0.0  ;;  %v2436_v63 = vsel %vm1036_vm4, %v2012_v10, 0.0  ;;  %640 = vadd.xlane.f32.xlu0 %v639_v14  ;;  %v1158_v56 = vsel %vm624_vm3, %v1145_v52, 0.0  ;;  %vm863_vm9 = vmand %vm775_vm0, %vm2251_vm7 }
 0x130   :  { %v727_v53 = vadd.f32 %v726_v54, %v725_v8  ;;  %v1174_v11 = vmul.f32 %v1145_v52, %v1145_v52  ;;  %v1238_v3 = vsel %vm714_vm6, %v1225_v6, 0.0  ;;  %v745_v41 = vmul.f32 %v712_v1, %v712_v1 }
 0x131   :  { %v2444_v40 = vadd.f32 %v1158_v56, %v1157_v7  ;;  %v2446_v13 = vadd.f32 %v1238_v3, %v1237_v9  ;;  %v1257_v12 = vmul.f32 %v1225_v6, %v1225_v6  ;;  %v2453_v29 = vmul.f32 %v2433_v25, %v2433_v25 }
 0x132   :  { %v729_v10 = vadd.f32 %v728_v42, %v727_v53  ;;  %v2449_v36 = vsel %vm624_vm3, %v1174_v11, 0.0  ;;  %v2458_v20 = vsel %vm2416_vm1, %v2055_v37, 0.0  ;;  %v2473_v1 = vmul.f32 %v2436_v63, %v2436_v63 }
 0x133   :  { %v2469_v7 = vsel %vm714_vm6, %v1257_v12, 0.0  ;;  %v2476_v54 = vsel %vm1202_vm14, %v2055_v37, 0.0  ;;  %v653_v50 = vmul.f32 %v1924_v51, %v1924_v51  ;;  %v2482_v14 = vmul.f32 %v2458_v20, %v2458_v20 }
 0x134   :  { %730 = vadd.xlane.f32.xlu1 %v729_v10  ;;  %v2486_v8 = vmul.f32 %v2476_v54, %v2476_v54  ;;  %v662_v42 = vadd.f32 %v2202_v49, %v1834_v43  ;;  %v663_v52 = vsel %vm624_vm3, %v2209_v15, 0.0  ;;  %v665_v37 = vsel %vm624_vm3, %v2263_v45, 0.0 }
 0x135   :  { %v667_v51 = vsel %vm624_vm3, %v653_v50, 0.0  ;;  %v752_v6 = vadd.f32 %v2176_v30, %v1797_v28  ;;  %v753_v53 = vsel %vm714_vm6, %v2215_v46, 0.0  ;;  %v755_v49 = vsel %vm714_vm6, %v2219_v55, 0.0 }
 0x136   :  { %v664_v43 = vadd.f32 %v663_v52, %v662_v42  ;;  %v757_v15 = vsel %vm714_vm6, %v744_v4, 0.0  ;;  %v2509_v45 = vsel %vm2464_vm11, %v2079_v5, 0.0  ;;  %v759_v30 = vsel %vm714_vm6, %v745_v41, 0.0 }
 0x137   :  { %v754_v28 = vadd.f32 %v753_v53, %v752_v6  ;;  %v2514_v46 = vmul.f32 %v2509_v45, %v2509_v45  ;;  %v807_v56 = vsel %vm775_vm0, %v1968_v24, 0.0  ;;  %v2520_v55 = vsel %vm1203_vm8, %v2079_v5, 0.0 }
 0x138   :  { %v666_v11 = vadd.f32 %v665_v37, %v664_v43  ;;  %v819_v4 = vadd.f32 %v2272_v47, %v2236_v62  ;;  %v820_v3 = vsel %vm624_vm3, %v2288_v60, 0.0  ;;  %v822_v12 = vsel %vm624_vm3, %v807_v56, 0.0 }
 0x139   :  { %v756_v41 = vadd.f32 %v755_v49, %v754_v28  ;;  %v836_v10 = vmul.f32 %v807_v56, %v807_v56  ;;  %v845_v9 = vadd.f32 %v2266_v32, %v1886_v39  ;;  %v846_v62 = vsel %vm624_vm3, %v2278_v57, 0.0 }
 0x13a   :  { %v668_v5 = vadd.f32 %v667_v51, %v666_v11  ;;  %v821_v50 = vadd.f32 %v820_v3, %v819_v4  ;;  %v848_v47 = vsel %vm624_vm3, %v2300_v22, 0.0  ;;  %v887_v52 = vsel %vm863_vm9, %v1968_v24, 0.0 }
 0x13b   :  { %v758_v60 = vadd.f32 %v757_v15, %v756_v41  ;;  %v847_v42 = vadd.f32 %v846_v62, %v845_v9  ;;  %v850_v18 = vsel %vm624_vm3, %v836_v10, 0.0  ;;  %v899_v6 = vadd.f32 %v2281_v31, %v2239_v48  ;;  %v2710_v10 = vld [vmem:[#allocation8_spill] sm:$0xff] }
 0x13c   :  { %669 = vadd.xlane.f32.xlu0 %v668_v5  ;;  %v823_v37 = vadd.f32 %v822_v12, %v821_v50  ;;  %v900_v39 = vsel %vm714_vm6, %v2305_v34, 0.0  ;;  %v902_v32 = vsel %vm714_vm6, %v887_v52, 0.0  ;;  %v919_v53 = vmul.f32 %v887_v52, %v887_v52 }
 0x13d   :  { %v760_v57 = vadd.f32 %v759_v30, %v758_v60  ;;  %v849_v51 = vadd.f32 %v848_v47, %v847_v42  ;;  %v928_v22 = vadd.f32 %v2269_v38, %v1926_v19  ;;  %v901_v43 = vadd.f32 %v900_v39, %v899_v6 }
 0x13e   :  { %v929_v24 = vsel %vm714_vm6, %v2283_v16, 0.0  ;;  %v931_v49 = vsel %vm714_vm6, %v2339_v0, 0.0  ;;  %v981_v48 = vsel %vm2352_vm2, %v2037_v17, 0.0  ;;  %v933_v15 = vsel %vm714_vm6, %v919_v53, 0.0 }
 0x13f   :  { %761 = vadd.xlane.f32.xlu1 %v760_v57  ;;  %v851_v31 = vadd.f32 %v850_v18, %v849_v51  ;;  %v930_v34 = vadd.f32 %v929_v24, %v928_v22  ;;  %v993_v28 = vadd.f32 %v2348_v23, %v2319_v26  ;;  %v903_v19 = vadd.f32 %v902_v32, %v901_v43 }
 0x140   :  { %824 = vadd.xlane.f32.xlu0 %v823_v37  ;;  %v994_v38 = vsel %vm624_vm3, %v2433_v25, 0.0  ;;  %v996_v16 = vsel %vm624_vm3, %v981_v48, 0.0  ;;  %v1010_v0 = vmul.f32 %v981_v48, %v981_v48  ;;  %v1019_v11 = vadd.f32 %v2342_v44, %v2148_v35  ;;  %v2712_v37 = vld [vmem:[#allocation6_spill] sm:$0xff] }
 0x141   :  { %v932_v30 = vadd.f32 %v931_v49, %v930_v34  ;;  %v995_v56 = vadd.f32 %v994_v38, %v993_v28  ;;  %v1020_v26 = vsel %vm624_vm3, %v2356_v2, 0.0  ;;  %v1022_v59 = vsel %vm624_vm3, %v2453_v29, 0.0  ;;  %v2709_v29 = vld [vmem:[#allocation5_spill] sm:$0xff] }
 0x142   :  { %v1024_v23 = vsel %vm624_vm3, %v1010_v0, 0.0  ;;  %v1061_v27 = vsel %vm1037_vm12, %v2037_v17, 0.0  ;;  %v1073_v25 = vadd.f32 %v2359_v61, %v2322_v33  ;;  %v1021_v41 = vadd.f32 %v1020_v26, %v1019_v11  ;;  %v2711_v17 = vld [vmem:[#allocation9_spill] sm:$0xff] }
 0x143   :  { %852 = vadd.xlane.f32.xlu1 %v851_v31  ;;  %v934_v4 = vadd.f32 %v933_v15, %v932_v30  ;;  %v997_v3 = vadd.f32 %v996_v16, %v995_v56  ;;  %v1074_v35 = vsel %vm714_vm6, %v2436_v63, 0.0  ;;  %v1076_v2 = vsel %vm714_vm6, %v1061_v27, 0.0 }
 0x144   :  { %904 = vadd.xlane.f32.xlu0 %v903_v19  ;;  %v1075_v44 = vadd.f32 %v1074_v35, %v1073_v25  ;;  %v1093_v12 = vmul.f32 %v1061_v27, %v1061_v27  ;;  %v1102_v9 = vadd.f32 %v2710_v10, %v2709_v29  ;;  %v1023_v5 = vadd.f32 %v1022_v59, %v1021_v41 }
 0x145   :  { %v1103_v50 = vsel %vm714_vm6, %v2711_v17, 0.0  ;;  %v1105_v33 = vsel %vm714_vm6, %v2473_v1, 0.0  ;;  %v1160_v61 = vsel %vm624_vm3, %v2458_v20, 0.0  ;;  %v1259_v63 = vmul.f32 %v2520_v55, %v2520_v55 }
 0x146   :  { %v1077_v62 = vadd.f32 %v1076_v2, %v1075_v44  ;;  %v1104_v47 = vadd.f32 %v1103_v50, %v1102_v9  ;;  %v1161_v60 = vadd.f32 %v1160_v61, %v2444_v40  ;;  %v1025_v42 = vadd.f32 %v1024_v23, %v1023_v5 }
 0x147   :  { %935 = vadd.xlane.f32.xlu1 %v934_v4  ;;  %v1107_v18 = vsel %vm714_vm6, %v1093_v12, 0.0  ;;  %v1162_v52 = vsel %vm624_vm3, %v2509_v45, 0.0  ;;  %v1185_v1 = vadd.f32 %v2404_v21, %v2712_v37  ;;  %v1188_v39 = vsel %vm624_vm3, %v2482_v14, 0.0  ;;  %v2713_v45 = vld [vmem:[#allocation7_spill] sm:$0xff] }
 0x148   :  { %998 = vadd.xlane.f32.xlu0 %v997_v3  ;;  %v1106_v6 = vadd.f32 %v1105_v33, %v1104_v47  ;;  %v1163_v20 = vadd.f32 %v1162_v52, %v1161_v60  ;;  %v1240_v32 = vsel %vm714_vm6, %v2476_v54, 0.0  ;;  %v1242_v51 = vsel %vm714_vm6, %v2520_v55, 0.0 }
 0x149   :  { %v1187_v40 = vadd.f32 %v2449_v36, %v1185_v1  ;;  %v1241_v57 = vadd.f32 %v1240_v32, %v2446_v13  ;;  %v1268_v53 = vadd.f32 %v2407_v58, %v2713_v45  ;;  %v1190_v22 = vsel %vm624_vm3, %v2514_v46, 0.0  ;;  %v623_v58 = vld [vmem:[#allocation2] sm:$0xf] }
 0x14a   :  { %v1108_v21 = vadd.f32 %v1107_v18, %v1106_v6  ;;  %v1271_v14 = vsel %vm714_vm6, %v2486_v8, 0.0  ;;  %v1273_v13 = vsel %vm714_vm6, %v1259_v63, 0.0  ;;  %vm2714_vm3 = vcmask 3072  }
 0x14b   :  { %1026 = vadd.xlane.f32.xlu1 %v1025_v42  ;;  %v1189_v43 = vadd.f32 %v1188_v39, %v1187_v40  ;;  %v1243_v54 = vadd.f32 %v1242_v51, %v1241_v57  ;;  %v1270_v36 = vadd.f32 %v2469_v7, %v1268_v53  ;;  %v645_v7 = vld [vmem:[#allocation3] sm:$0xf]  ;;  %vm2715_vm6 = vmmov %vm2714_vm3 }
 0x14c   :  { %1078 = vadd.xlane.f32.xlu0 %v1077_v62  ;;  %vm2716_vm7 = vmmov %vm2714_vm3 }
 0x14d   :  { %v1191_v24 = vadd.f32 %v1190_v22, %v1189_v43  ;;  %v1272_v55 = vadd.f32 %v1271_v14, %v1270_v36  ;;  %vm2717_vm5 = vmmov %vm2714_vm3 }
 0x14e   :  { %vm2718_vm13 = vmmov %vm2714_vm3 }
 0x14f   :  { %1109 = vadd.xlane.f32.xlu1 %v1108_v21  ;;  %v1274_v49 = vadd.f32 %v1273_v13, %v1272_v55  ;;  %vm2719_vm2 = vmmov %vm2714_vm3 }
 0x150   :  { %1164 = vadd.xlane.f32.xlu0 %v1163_v20  ;;  %vm2720_vm10 = vmmov %vm2719_vm2 }
 0x151   :  { %vm2721_vm0 = vmmov %vm2719_vm2 }
 0x152   :  { %vm2722_vm15 = vmmov %vm2721_vm0 }
 0x153   :  { %1192 = vadd.xlane.f32.xlu1 %v1191_v24  ;;  %vm2723_vm4 = vmmov %vm2721_vm0 }
 0x154   :  { %1244 = vadd.xlane.f32.xlu0 %v1243_v54  ;;  %vm2724_vm1 = vmmov %vm2721_vm0 }
 0x155   :  { %vm2725_vm14 = vmmov %vm2721_vm0 }
 0x156   :  { %vm2726_vm11 = vmmov %vm2721_vm0 }
 0x157   :  { %1275 = vadd.xlane.f32.xlu1 %v1274_v49  ;;  %vm2727_vm8 = vmmov %vm2721_vm0 }
 0x158   :  { %vm2728_vm9 = vmmov %vm2721_vm0 }
 0x159   :  { %vm2729_vm12 = vmmov %vm2721_vm0 }
 0x1bc   :  { %v641_v46 = vpop.xlane.xlu0 %640 }
 0x1bd   :  { %v642_v48 = vadd.f32 %v641_v46, %v623_v58  ;;  %v1395_v58 = vmov 1   ;;  %v1292_v46 = vld [vmem:[%s2634_s2] sm:$0xf] }
 0x1be   :  { %1380 = vset.pattern.permute.xlu0 %v1395_v58 }
 0x1bf   :  { %644 = vst.msk [vmem:[#allocation2] sm:$0xf] %vm2714_vm3, %v642_v48 }
 0x1c1   :  { %v731_v8 = vpop.xlane.xlu1 %730 }
 0x1c2   :  { %v733_v31 = vrot.slane %v731_v8, 4 }
 0x1c6   :  { %v713_v34 = vld [vmem:[#allocation2] sm:$0xf] }
 0x1c7   :  { %v735_v15 = vadd.f32 %v733_v31, %v713_v34 }
 0x1c9   :  { %v670_v28 = vpop.xlane.xlu0 %669  ;;  %736 = vst.msk [vmem:[#allocation2] sm:$0xf] %vm2715_vm6, %v735_v15  ;;  %vm1314_vm6 = vcmask 11264  }
 0x1ca   :  { %v671_v19 = vadd.f32 %v670_v28, %v645_v7  ;;  %v2730_v28 = vld [vmem:[#allocation4_spill] sm:$0xff] }
 0x1cb   :  { %vm1302_vm3 = vcmp.eq.s32.totalorder %v2730_v28, 0 }
 0x1cc   :  { %672 = vst.msk [vmem:[#allocation3] sm:$0xf] %vm2716_vm7, %v671_v19  ;;  %v762_v38 = vpop.xlane.xlu1 %761 }
 0x1cd   :  { %v825_v0 = vpop.xlane.xlu0 %824  ;;  %v764_v30 = vrot.slane %v762_v38, 4 }
 0x1d0   :  { %v808_v16 = vld [vmem:[#allocation2] sm:$0xf]  ;;  %v853_v3 = vpop.xlane.xlu1 %852 }
 0x1d1   :  { %v826_v56 = vadd.f32 %v825_v0, %v808_v16  ;;  %v905_v59 = vpop.xlane.xlu0 %904 }
 0x1d2   :  { %v907_v23 = vrot.slane %v905_v59, 4 }
 0x1d3   :  { %v737_v11 = vld [vmem:[#allocation3] sm:$0xf]  ;;  %827 = vst.msk [vmem:[#allocation2] sm:$0xf] %vm2717_vm5, %v826_v56 }
 0x1d4   :  { %v766_v26 = vadd.f32 %v764_v30, %v737_v11  ;;  %v936_v35 = vpop.xlane.xlu1 %935 }
 0x1d5   :  { %v999_v2 = vpop.xlane.xlu0 %998  ;;  %v938_v12 = vrot.slane %v936_v35, 4 }
 0x1d6   :  { %767 = vst.msk [vmem:[#allocation3] sm:$0xf] %vm2718_vm13, %v766_v26 }
 0x1d8   :  { %v1027_v63 = vpop.xlane.xlu1 %1026 }
 0x1d9   :  { %v1079_v5 = vpop.xlane.xlu0 %1078 }
 0x1da   :  { %v888_v27 = vld [vmem:[#allocation2] sm:$0xf]  ;;  %v1081_v17 = vrot.slane %v1079_v5, 4 }
 0x1db   :  { %v909_v25 = vadd.f32 %v907_v23, %v888_v27 }
 0x1dc   :  { %v1110_v47 = vpop.xlane.xlu1 %1109 }
 0x1dd   :  { %v828_v4 = vld [vmem:[#allocation3] sm:$0xf]  ;;  %910 = vst.msk [vmem:[#allocation2] sm:$0xf] %vm2719_vm2, %v909_v25  ;;  %v1165_v42 = vpop.xlane.xlu0 %1164  ;;  %v1112_v18 = vrot.slane %v1110_v47, 4 }
 0x1de   :  { %v854_v41 = vadd.f32 %v853_v3, %v828_v4 }
 0x1e0   :  { %855 = vst.msk [vmem:[#allocation3] sm:$0xf] %vm2720_vm10, %v854_v41  ;;  %v1193_v57 = vpop.xlane.xlu1 %1192 }
 0x1e1   :  { %v1245_v6 = vpop.xlane.xlu0 %1244 }
 0x1e2   :  { %v1247_v20 = vrot.slane %v1245_v6, 4 }
 0x1e4   :  { %v982_v44 = vld [vmem:[#allocation2] sm:$0xf]  ;;  %v1276_v45 = vpop.xlane.xlu1 %1275 }
 0x1e5   :  { %v1000_v29 = vadd.f32 %v999_v2, %v982_v44  ;;  %v1278_v53 = vrot.slane %v1276_v45, 4 }
 0x1e7   :  { %v911_v10 = vld [vmem:[#allocation3] sm:$0xf]  ;;  %1001 = vst.msk [vmem:[#allocation2] sm:$0xf] %vm2721_vm0, %v1000_v29 }
 0x1e8   :  { %v940_v9 = vadd.f32 %v938_v12, %v911_v10 }
 0x1ea   :  { %941 = vst.msk [vmem:[#allocation3] sm:$0xf] %vm2722_vm15, %v940_v9 }
 0x1ee   :  { %v1062_v50 = vld [vmem:[#allocation2] sm:$0xf] }
 0x1ef   :  { %v1083_v33 = vadd.f32 %v1081_v17, %v1062_v50 }
 0x1f1   :  { %v1002_v61 = vld [vmem:[#allocation3] sm:$0xf]  ;;  %1084 = vst.msk [vmem:[#allocation2] sm:$0xf] %vm2723_vm4, %v1083_v33 }
 0x1f2   :  { %v1028_v62 = vadd.f32 %v1027_v63, %v1002_v61 }
 0x1f4   :  { %1029 = vst.msk [vmem:[#allocation3] sm:$0xf] %vm2724_vm1, %v1028_v62 }
 0x1f8   :  { %v1148_v60 = vld [vmem:[#allocation2] sm:$0xf] }
 0x1f9   :  { %v1166_v52 = vadd.f32 %v1165_v42, %v1148_v60 }
 0x1fb   :  { %v1085_v37 = vld [vmem:[#allocation3] sm:$0xf]  ;;  %1167 = vst.msk [vmem:[#allocation2] sm:$0xf] %vm2725_vm14, %v1166_v52 }
 0x1fc   :  { %v1114_v1 = vadd.f32 %v1112_v18, %v1085_v37 }
 0x1fe   :  { %1115 = vst.msk [vmem:[#allocation3] sm:$0xf] %vm2726_vm11, %v1114_v1 }
 0x202   :  { %v1228_v39 = vld [vmem:[#allocation2] sm:$0xf] }
 0x203   :  { %v1249_v32 = vadd.f32 %v1247_v20, %v1228_v39 }
 0x205   :  { %v1168_v40 = vld [vmem:[#allocation3] sm:$0xf]  ;;  %1250 = vst.msk [vmem:[#allocation2] sm:$0xf] %vm2727_vm8, %v1249_v32 }
 0x206   :  { %v1194_v51 = vadd.f32 %v1193_v57, %v1168_v40 }
 0x208   :  { %1195 = vst.msk [vmem:[#allocation3] sm:$0xf] %vm2728_vm9, %v1194_v51 }
 0x20c   :  { %v1285_v14 = vld [vmem:[#allocation2] sm:$0xf] }
 0x20d   :  { %v1286_v43 = vmul.f32 0.00014814814, %v1285_v14 }
 0x20f   :  { %v1251_v21 = vld [vmem:[#allocation3] sm:$0xf]  ;;  %v1289_v13 = vmul.f32 %v1286_v43, %v1286_v43 }
 0x210   :  { %v1280_v22 = vadd.f32 %v1278_v53, %v1251_v21 }
 0x212   :  { %1281 = vst.msk [vmem:[#allocation3] sm:$0xf] %vm2729_vm12, %v1280_v22 }
 0x219   :  { %v1287_v54 = vld [vmem:[#allocation3] sm:$0xf] }
 0x21a   :  { %v1288_v36 = vmul.f32 0.00014814814, %v1287_v54 }
 0x21c   :  { %v1290_v24 = vsub.f32 %v1288_v36, %v1289_v13 }
 0x21e   :  { %v1291_v55 = vmax.f32 %v1290_v24, 0.0 }
 0x220   :  { %v1293_v49 = vadd.f32 1e-05, %v1291_v55 }
 0x222   :  { %1391 = vrsqrt.f32 %v1293_v49 }
 0x22c   :  { %v1392_v48 = vpop.eup %1391 }
 0x22d   :  { %v1295_v8 = vmul.f32 %v1392_v48, %v1292_v46 }
 0x22f   :  { %1305 = vperm.xlu1 %1378, %v1295_v8   ;;  %v1296_v31 = vmul.f32 %v1295_v8, %v1286_v43 }
 0x231   :  { %1298 = vrot.lane.b32.xlu0 %v1296_v31, %s1396_s20 }
 0x233   :  { %1379 = vset.pattern.permute.xlu1 %v1395_v58 }
 0x2a3   :  { %v1299_v34 = vpop.permute.xlu0 %1298 }
 0x2a4   :  { %v1301_v7 = vsub.f32 %v1292_v46, %v1299_v34 }
 0x2a6   :  { %1310 = vperm.xlu1 %1379, %v1301_v7  }
 0x2ae   :  { %v1306_v15 = vpop.permute.xlu1 %1305 }
 0x325   :  { %v1311_v19 = vpop.permute.xlu1 %1310 }
 0x326   :  { %v1313_v38 = vsel %vm1302_vm3, %v1306_v15, %v1311_v19 }
 0x327   :  { %1315 = vst.msk [vmem:[%s2635_s4] sm:$0xf] %vm1314_vm6, %v1313_v38 }

</bundles_post_ra>
